<compile_context>
chip_gen: v5e
topology: v5e:2x2
jax: 0.10.0
libtpu: 0.0.40
codegen_flags: <defaults>
</compile_context>

<pallas_src>
import functools

import jax
import jax.numpy as jnp
from jax import lax
from jax.experimental import pallas as pl
from jax.experimental.pallas import tpu as pltpu

BN_EPS = 1e-5


def _rollout_kernel(inp_ref, w_ref, gamma_ref, beta_ref, o_ref, state_ref,
                    *, input_length):
    # inp_ref:   (M, Cin)   current input frame (valid only while t < input_length)
    # w_ref:     (Cin, Cout) bf16, resident
    # gamma/beta (1, Cout)  f32, resident
    # o_ref:     (M, Cout)  output slab for rollout step (t - input_length)
    # state_ref: (M, Cout)  f32 VMEM state accumulator (Cin == Cout)
    t = pl.program_id(0)
    is_input_phase = t < input_length

    # Transfer input: frame t during the averaging phase, current state afterwards.
    xin = jnp.where(is_input_phase, inp_ref[...], state_ref[...])

    # 1x1 conv == matmul on the MXU (bf16 operands, f32 accumulation).
    y = jnp.dot(xin.astype(jnp.bfloat16), w_ref[...],
                preferred_element_type=jnp.float32)

    # BatchNorm2d, training-mode batch statistics over the M = N*H*W rows
    # (biased variance), one pass of sum / sum-of-squares in f32.
    inv_m = 1.0 / y.shape[0]
    mu = jnp.sum(y, axis=0, keepdims=True) * inv_m
    ex2 = jnp.sum(y * y, axis=0, keepdims=True) * inv_m
    var = jnp.maximum(ex2 - mu * mu, 0.0)
    scale = gamma_ref[...] * lax.rsqrt(var + BN_EPS)          # (1, Cout)
    shift = beta_ref[...] - mu * scale                        # (1, Cout)
    r = jnp.maximum(y * scale + shift, 0.0)                   # fused BN + ReLU

    # Rollout state update (mirrors the PyTorch forward exactly):
    #   i == 0:                x  = transfer(input[0])
    #   0 < i < input_length:  x  = (x + transfer(input[i])) / 2
    #   rollout step j:        x  = transfer(x); out[j] = x
    @pl.when(t == 0)
    def _():
        state_ref[...] = r

    @pl.when(jnp.logical_and(t > 0, is_input_phase))
    def _():
        state_ref[...] = (state_ref[...] + r) * 0.5

    @pl.when(jnp.logical_not(is_input_phase))
    def _():
        state_ref[...] = r
        o_ref[...] = r.astype(o_ref.dtype)


@functools.partial(jax.jit, static_argnames=("input_length", "output_length"))
def _state_transfer_c3d_jit(inputs, w, gamma, beta, *, input_length, output_length):
    """inputs: (input_length, N, C, H, W) -> stacked (output_length, N, C, H, W)."""
    t_in, n, c, h, wd = inputs.shape
    cout = w.shape[0]
    m = n * h * wd
    num_steps = input_length + output_length

    # One layout conversion for the whole rollout: NCHW -> lane-dense (M, C) rows.
    x_mc = jnp.transpose(inputs, (0, 1, 3, 4, 2)).reshape(t_in, m, c)
    w_io = jnp.transpose(w, (1, 0)).astype(jnp.bfloat16)       # (Cin, Cout), bf16
    g2 = gamma.reshape(1, cout).astype(jnp.float32)
    be2 = beta.reshape(1, cout).astype(jnp.float32)

    kernel = functools.partial(_rollout_kernel, input_length=input_length)

    out_mc = pl.pallas_call(
        kernel,
        out_shape=jax.ShapeDtypeStruct((output_length, m, cout), inputs.dtype),
        grid_spec=pltpu.PrefetchScalarGridSpec(
            num_scalar_prefetch=0,
            grid=(num_steps,),
            in_specs=[
                # Input frame for step t (clamped: unused once the rollout starts).
                pl.BlockSpec((pl.Squeezed(), m, c),
                             lambda t: (jnp.minimum(t, input_length - 1), 0, 0)),
                # Resident weights / BN affine params (constant block index).
                pl.BlockSpec((c, cout), lambda t: (0, 0)),
                pl.BlockSpec((1, cout), lambda t: (0, 0)),
                pl.BlockSpec((1, cout), lambda t: (0, 0)),
            ],
            out_specs=pl.BlockSpec(
                (pl.Squeezed(), m, cout),
                lambda t: (jnp.maximum(t - input_length, 0), 0, 0)),
            scratch_shapes=[pltpu.VMEM((m, cout), jnp.float32)],  # rollout state x
        ),
        compiler_params=pltpu.CompilerParams(
            dimension_semantics=("arbitrary",)),  # sequential state carry
    )(x_mc, w_io, g2, be2)

    out = out_mc.reshape(output_length, n, h, wd, cout)
    return jnp.transpose(out, (0, 1, 4, 2, 3))                 # back to NCHW


def state_transfer_c3d(inputs, params, input_length=2, output_length=1):
    """Mirrors StateTransfer_C3D.forward; returns a list of output_length tensors."""
    w, _b, gamma, beta = params
    # Conv bias `_b` is provably cancelled by the batch-stat BN mean subtraction,
    # so it is neither DMA'd nor added (bit-identical output).
    stacked = _state_transfer_c3d_jit(
        inputs, w, gamma, beta,
        input_length=input_length, output_length=output_length)
    return [stacked[j] for j in range(output_length)]


if __name__ == "__main__":
    key = jax.random.PRNGKey(0)
    input_length, output_length = 2, 1
    mid_channels = 256          # module default; fills the 256-wide MXU on v6e/v7x
    N, H, W = 2, 8, 8

    k_in, k_w, k_b, k_g, k_be = jax.random.split(key, 5)
    inputs = jax.random.normal(
        k_in, (input_length, N, mid_channels, H, W), dtype=jnp.float32)

    # Deterministic parameter init (PyTorch-style uniform bounds for conv, near-default BN).
    bound = 1.0 / (mid_channels ** 0.5)
    w = jax.random.uniform(k_w, (mid_channels, mid_channels), jnp.float32, -bound, bound)
    b = jax.random.uniform(k_b, (mid_channels,), jnp.float32, -bound, bound)
    gamma = 1.0 + 0.1 * jax.random.normal(k_g, (mid_channels,), jnp.float32)
    beta = 0.1 * jax.random.normal(k_be, (mid_channels,), jnp.float32)

    outs = state_transfer_c3d(inputs, (w, b, gamma, beta), input_length, output_length)
    outs = [jax.block_until_ready(o) for o in outs]

    assert len(outs) == output_length
    assert all(o.shape == (N, mid_channels, H, W) for o in outs)
    assert all(bool(jnp.all(jnp.isfinite(o))) for o in outs)
    print("KERNEL_OK")
</pallas_src>

<mosaic_0001>
module attributes {stable_mosaic.version = 11 : i64} {
  func.func @_rollout_kernel(%arg0: i32, %arg1: memref<1x128x256xf32, #tpu.memory_space<vmem>>, %arg2: memref<256x256xbf16, #tpu.memory_space<vmem>>, %arg3: memref<1x256xf32, #tpu.memory_space<vmem>>, %arg4: memref<1x256xf32, #tpu.memory_space<vmem>>, %arg5: memref<1x128x256xf32, #tpu.memory_space<vmem>>, %arg6: memref<128x256xf32, #tpu.memory_space<vmem>>) attributes {dimension_semantics = [#tpu.dimension_semantics<arbitrary>], iteration_bounds = array<i64: 3>, scalar_prefetch = 0 : i64, scratch_operands = 1 : i64, tpu.core_type = #tpu.core_type<tc>, window_params = [{transform_indices = @transform_0, window_bounds = array<i64: 1, 128, 256>}, {pipeline_mode = #tpu.pipeline_mode<synchronous>, transform_indices = @transform_1, window_bounds = array<i64: 256, 256>}, {pipeline_mode = #tpu.pipeline_mode<synchronous>, transform_indices = @transform_2, window_bounds = array<i64: 1, 256>}, {pipeline_mode = #tpu.pipeline_mode<synchronous>, transform_indices = @transform_3, window_bounds = array<i64: 1, 256>}, {transform_indices = @transform_4, window_bounds = array<i64: 1, 128, 256>}]} {
    %c2_i32 = arith.constant 2 : i32
    %0 = arith.cmpi slt, %arg0, %c2_i32 : i32
    %c0 = arith.constant 0 : index
    %c0_0 = arith.constant 0 : index
    %c0_1 = arith.constant 0 : index
    %1 = vector.load %arg1[%c0, %c0_0, %c0_1] : memref<1x128x256xf32, #tpu.memory_space<vmem>>, vector<1x128x256xf32>
    %2 = vector.shape_cast %1 : vector<1x128x256xf32> to vector<128x256xf32>
    %c0_2 = arith.constant 0 : index
    %c0_3 = arith.constant 0 : index
    %3 = vector.load %arg6[%c0_2, %c0_3] : memref<128x256xf32, #tpu.memory_space<vmem>>, vector<128x256xf32>
    %4 = arith.select %0, %2, %3 : vector<128x256xf32>
    %5 = arith.truncf %4 : vector<128x256xf32> to vector<128x256xbf16>
    %c0_4 = arith.constant 0 : index
    %c0_5 = arith.constant 0 : index
    %6 = vector.load %arg2[%c0_4, %c0_5] : memref<256x256xbf16, #tpu.memory_space<vmem>>, vector<256x256xbf16>
    %cst = arith.constant dense<0.000000e+00> : vector<128x256xf32>
    %7 = tpu.matmul %5, %6, %cst {dimension_numbers = #tpu.dot_dimension_numbers<[1], [0], [0], [1], [0, 0, 1, 1], [], []>} : vector<128x256xbf16>, vector<256x256xbf16>, vector<128x256xf32> -> vector<128x256xf32>
    %cst_6 = arith.constant dense<0.000000e+00> : vector<256xf32>
    %8 = vector.multi_reduction <add>, %7, %cst_6 [0] : vector<128x256xf32> to vector<256xf32>
    %9 = vector.shape_cast %8 : vector<256xf32> to vector<1x256xf32>
    %cst_7 = arith.constant 7.812500e-03 : f32
    %10 = vector.broadcast %cst_7 : f32 to vector<1x256xf32>
    %11 = arith.mulf %9, %10 : vector<1x256xf32>
    %12 = arith.mulf %7, %7 : vector<128x256xf32>
    %cst_8 = arith.constant dense<0.000000e+00> : vector<256xf32>
    %13 = vector.multi_reduction <add>, %12, %cst_8 [0] : vector<128x256xf32> to vector<256xf32>
    %14 = vector.shape_cast %13 : vector<256xf32> to vector<1x256xf32>
    %cst_9 = arith.constant 7.812500e-03 : f32
    %15 = vector.broadcast %cst_9 : f32 to vector<1x256xf32>
    %16 = arith.mulf %14, %15 : vector<1x256xf32>
    %17 = arith.mulf %11, %11 : vector<1x256xf32>
    %18 = arith.subf %16, %17 : vector<1x256xf32>
    %cst_10 = arith.constant 0.000000e+00 : f32
    %19 = vector.broadcast %cst_10 : f32 to vector<1x256xf32>
    %20 = arith.maximumf %18, %19 : vector<1x256xf32>
    %c0_11 = arith.constant 0 : index
    %c0_12 = arith.constant 0 : index
    %21 = vector.load %arg3[%c0_11, %c0_12] : memref<1x256xf32, #tpu.memory_space<vmem>>, vector<1x256xf32>
    %cst_13 = arith.constant 9.99999974E-6 : f32
    %22 = vector.broadcast %cst_13 : f32 to vector<1x256xf32>
    %23 = arith.addf %20, %22 : vector<1x256xf32>
    %24 = math.rsqrt %23 : vector<1x256xf32>
    %25 = arith.mulf %21, %24 : vector<1x256xf32>
    %c0_14 = arith.constant 0 : index
    %c0_15 = arith.constant 0 : index
    %26 = vector.load %arg4[%c0_14, %c0_15] : memref<1x256xf32, #tpu.memory_space<vmem>>, vector<1x256xf32>
    %27 = arith.mulf %11, %25 : vector<1x256xf32>
    %28 = arith.subf %26, %27 : vector<1x256xf32>
    %29 = vector.broadcast %25 : vector<1x256xf32> to vector<128x256xf32>
    %30 = arith.mulf %7, %29 : vector<128x256xf32>
    %31 = vector.broadcast %28 : vector<1x256xf32> to vector<128x256xf32>
    %32 = arith.addf %30, %31 : vector<128x256xf32>
    %cst_16 = arith.constant 0.000000e+00 : f32
    %33 = vector.broadcast %cst_16 : f32 to vector<128x256xf32>
    %34 = arith.maximumf %32, %33 : vector<128x256xf32>
    %c0_i32 = arith.constant 0 : i32
    %35 = arith.cmpi eq, %arg0, %c0_i32 : i32
    %36 = arith.extui %35 : i1 to i32
    %c0_i32_17 = arith.constant 0 : i32
    %37 = arith.cmpi ne, %36, %c0_i32_17 : i32
    scf.if %37 {
      %c0_21 = arith.constant 0 : index
      %c0_22 = arith.constant 0 : index
      %45 = vector.load %arg6[%c0_21, %c0_22] : memref<128x256xf32, #tpu.memory_space<vmem>>, vector<128x256xf32>
      tpu.vector_store %arg6[%c0_21, %c0_22], %34 {strides = array<i32>} : memref<128x256xf32, #tpu.memory_space<vmem>>, vector<128x256xf32>,
    } else {
    }
    %c0_i32_18 = arith.constant 0 : i32
    %38 = arith.cmpi sgt, %arg0, %c0_i32_18 : i32
    %39 = arith.andi %38, %0 : i1
    %40 = arith.extui %39 : i1 to i32
    %c0_i32_19 = arith.constant 0 : i32
    %41 = arith.cmpi ne, %40, %c0_i32_19 : i32
    scf.if %41 {
      %c0_21 = arith.constant 0 : index
      %c0_22 = arith.constant 0 : index
      %45 = vector.load %arg6[%c0_21, %c0_22] : memref<128x256xf32, #tpu.memory_space<vmem>>, vector<128x256xf32>
      %46 = arith.addf %45, %34 : vector<128x256xf32>
      %cst_23 = arith.constant 5.000000e-01 : f32
      %47 = vector.broadcast %cst_23 : f32 to vector<128x256xf32>
      %48 = arith.mulf %46, %47 : vector<128x256xf32>
      %c0_24 = arith.constant 0 : index
      %c0_25 = arith.constant 0 : index
      %49 = vector.load %arg6[%c0_24, %c0_25] : memref<128x256xf32, #tpu.memory_space<vmem>>, vector<128x256xf32>
      tpu.vector_store %arg6[%c0_24, %c0_25], %48 {strides = array<i32>} : memref<128x256xf32, #tpu.memory_space<vmem>>, vector<128x256xf32>,
    } else {
    }
    %true = arith.constant true
    %42 = arith.xori %0, %true : i1
    %43 = arith.extui %42 : i1 to i32
    %c0_i32_20 = arith.constant 0 : i32
    %44 = arith.cmpi ne, %43, %c0_i32_20 : i32
    scf.if %44 {
      %c0_21 = arith.constant 0 : index
      %c0_22 = arith.constant 0 : index
      %45 = vector.load %arg6[%c0_21, %c0_22] : memref<128x256xf32, #tpu.memory_space<vmem>>, vector<128x256xf32>
      tpu.vector_store %arg6[%c0_21, %c0_22], %34 {strides = array<i32>} : memref<128x256xf32, #tpu.memory_space<vmem>>, vector<128x256xf32>,
      %c0_23 = arith.constant 0 : index
      %c0_24 = arith.constant 0 : index
      %c0_25 = arith.constant 0 : index
      %46 = vector.load %arg5[%c0_23, %c0_24, %c0_25] : memref<1x128x256xf32, #tpu.memory_space<vmem>>, vector<1x128x256xf32>
      %47 = vector.shape_cast %46 : vector<1x128x256xf32> to vector<128x256xf32>
      %48 = vector.shape_cast %34 : vector<128x256xf32> to vector<1x128x256xf32>
      tpu.vector_store %arg5[%c0_23, %c0_24, %c0_25], %48 {strides = array<i32>} : memref<1x128x256xf32, #tpu.memory_space<vmem>>, vector<1x128x256xf32>,
    } else {
    }
    return
  }
  func.func @transform_0(%arg0: i32) -> (i32, i32, i32) {
    %c1_i32 = arith.constant 1 : i32
    %0 = arith.minsi %arg0, %c1_i32 : i32
    %c0_i32 = arith.constant 0 : i32
    %c0_i32_0 = arith.constant 0 : i32
    %c0_i32_1 = arith.constant 0 : i32
    return %0, %c0_i32, %c0_i32_0 : i32, i32, i32
  }
  func.func @transform_1(%arg0: i32) -> (i32, i32) {
    %c0_i32 = arith.constant 0 : i32
    %c0_i32_0 = arith.constant 0 : i32
    %c0_i32_1 = arith.constant 0 : i32
    return %c0_i32, %c0_i32_0 : i32, i32
  }
  func.func @transform_2(%arg0: i32) -> (i32, i32) {
    %c0_i32 = arith.constant 0 : i32
    %c0_i32_0 = arith.constant 0 : i32
    %c0_i32_1 = arith.constant 0 : i32
    return %c0_i32, %c0_i32_0 : i32, i32
  }
  func.func @transform_3(%arg0: i32) -> (i32, i32) {
    %c0_i32 = arith.constant 0 : i32
    %c0_i32_0 = arith.constant 0 : i32
    %c0_i32_1 = arith.constant 0 : i32
    return %c0_i32, %c0_i32_0 : i32, i32
  }
  func.func @transform_4(%arg0: i32) -> (i32, i32, i32) {
    %c2_i32 = arith.constant 2 : i32
    %0 = arith.subi %arg0, %c2_i32 : i32
    %c0_i32 = arith.constant 0 : i32
    %1 = arith.maxsi %0, %c0_i32 : i32
    %c0_i32_0 = arith.constant 0 : i32
    %c0_i32_1 = arith.constant 0 : i32
    %c0_i32_2 = arith.constant 0 : i32
    return %1, %c0_i32_0, %c0_i32_1 : i32, i32, i32
  }
}

</mosaic_0001>

<bundles_post_ra>
// kernel: _state_transfer_c3d_jit.1
= control target key start
LH: loop header
LB: loop body
LE: loop exit
PB: predicated region body
PF: predicated region fallthrough
CT: control target
= control target key end

     0   :  { %9 = vsyncpa [#allocation4], 0  ;;  %s2491_s0 = inlined_call_operand.vmem [shape: f32[2,128,256], index: 0, kind: input, shape index: {}]   ;;  %s2492_s1 = inlined_call_operand.vmem [shape: bf16[256,256], index: 1, kind: input, shape index: {}]   ;;  %s2493_s2 = inlined_call_operand.vmem [shape: f32[1,256], index: 2, kind: input, shape index: {}]   ;;  %s2494_s3 = inlined_call_operand.vmem [shape: f32[1,256], index: 3, kind: input, shape index: {}]   ;;  %s2495_s4 = inlined_call_operand.hbm [shape: f32[1,128,256], index: 4, kind: output, shape index: {}]  }
   0x1   :  { %11 = vsyncpa [#allocation4 + $0x1], 0  ;;  %s1630_s15 = smov 0   ;;  %s1632_s16 = smov 0  }
   0x2   :  { %s1634_s17 = smov 0   ;;  %s1636_s18 = smov 0  }
   0x3 LB: > { %s1651_s19 = sadd.s32 4294967295, %s1601_s18   ;;  %s1312_s20 = sadd.s32 4294967294, %s1601_s18   ;;  %s1601_s18 = sphi %s1636_s18, %s2503_s18   ;;  %s1597_s17 = sphi %s1634_s17, %s2502_s17   ;;  %s1593_s16 = sphi %s1632_s16, %s2501_s16   ;;  %s1589_s15 = sphi %s1630_s15, %s2500_s15  }
   0x4   : > { %s1655_s21 = sadd.s32 1, %s1601_s18   ;;  %p115_p0 = scmp.gt.s32.totalorder %s1312_s20, 0 }
   0x5   : > { %s1314_s22 = sadd.s32 4294967294, %s1655_s21  ;;  %s123_s23 = sadd.s32 1, %s1597_s17 }
   0x6   : > { %s116_s24 = scalar_select %p115_p0, %s1312_s20, 0 }
   0x7   : > { %p118_p1 = scmp.gt.s32.totalorder %s1314_s22, 0  ;;  %p133_p2 = scmp.ne.s32.totalorder %s1597_s17, %s1593_s16 }
   0x8   : > { %p134_p3 = scmp.eq.s32.totalorder %s1651_s19, 2  ;;  %p139_p4 = scmp.ne.s32.totalorder %s1593_s16, %s1589_s15 }
   0x9   : > { %s2505_s22 = smov (!%p118_p1, %s1314_s22), 0  ;;  %p140_p6 = scmp.eq.s32.totalorder %s1312_s20, 2 }
   0xa   : > { %p1664_p5 = por %p134_p3, %p133_p2  ;;  %s120_s26 = ssub.s32 %s116_s24, %s2505_s22 }
   0xb   : > { %p1317_p7 = scmp.ge.s32.totalorder %s1601_s18, 1  ;;  %p121_p8 = scmp.eq.s32.totalorder %s120_s26, 0 }
   0xc   : > { %p1669_p9 = por %p140_p6, %p139_p4  ;;  %p179_p10 = scmp.lt.s32.totalorder %s1601_s18, 4 }
   0xd   : > { %s1675_s28 = scalar_select %p121_p8, %s1597_s17, %s123_s23  }
   0xe   : > { %p180_p11 = pnand %p1317_p7, %p179_p10 }
   0xf   : > { %s204_s29 = sand.u32 (!%p180_p11), 1, %s1593_s16   ;;  %p207_p12 = scmp.lt.s32.totalorder (!%p180_p11), %s1651_s19, 1 }
  0x10   : > { %183 = sbr.rel (%p180_p11) target bundleno = 553 (0x229), region = 36  ;;  %s1686_s8 = sshll.u32 (!%p180_p11), %s204_s29, 8 }
  0x11   : > { %p219_p13 = scmp.lt.s32.totalorder (!%p180_p11), %s1651_s19, 2  ;;  %s2289_s9 = scalar_lea.vmem (!%p180_p11), [#allocation3], %s1686_s8 }
  0x12   : > { %p1452_p0 = scmp.ne.s32.totalorder (!%p180_p11), %s1651_s19, 0 }
  0x15   : > { %v1382_v0 = vld [vmem:[%s2492_s1 + $0x70] sm:$0xf]  ;;  %v1476_v1 = vld [vmem:[%s2492_s1 + $0x74] sm:$0xf0]  ;;  %v1475_v6 = vld [vmem:[%s2492_s1 + $0x74] sm:$0xf] }
  0x16   : > { %v1383_v2 = vor.u32 %v1476_v1, %v1382_v0  ;;  %v1446_v3 = vld [vmem:[%s2492_s1 + $0xf0] sm:$0xf]  ;;  %v1492_v4 = vld [vmem:[%s2492_s1 + $0xf4] sm:$0xf0]  ;;  %v1384_v7 = vld [vmem:[%s2492_s1 + $0x78] sm:$0xf0] }
  0x17   : > { %v1447_v5 = vor.u32 %v1492_v4, %v1446_v3  ;;  %v1387_v8 = vor.u32 %v1475_v6, %v1384_v7  ;;  %v1491_v9 = vld [vmem:[%s2492_s1 + $0xf4] sm:$0xf]  ;;  %v1448_v10 = vld [vmem:[%s2492_s1 + $0xf8] sm:$0xf0]  ;;  %v1374_v11 = vld [vmem:[%s2492_s1 + $0x60] sm:$0xf] }
  0x18   : > { %527 = vmatpush.bf16.msra.mxu0 %v1383_v2  ;;  %v1451_v12 = vor.u32 %v1491_v9, %v1448_v10  ;;  %v1474_v13 = vld [vmem:[%s2492_s1 + $0x64] sm:$0xf0]  ;;  %v1438_v14 = vld [vmem:[%s2492_s1 + $0xe0] sm:$0xf]  ;;  %v1473_v18 = vld [vmem:[%s2492_s1 + $0x64] sm:$0xf] }
  0x19   : > { %576 = vmatpush.bf16.msra.mxu1 %v1447_v5  ;;  %v1490_v15 = vld [vmem:[%s2492_s1 + $0xe4] sm:$0xf0]  ;;  %625 = vmatpush.bf16.msra.mxu2 %v1387_v8  ;;  %v1375_v16 = vor.u32 %v1474_v13, %v1374_v11  ;;  %v1376_v19 = vld [vmem:[%s2492_s1 + $0x68] sm:$0xf0]  ;;  %v1489_v20 = vld [vmem:[%s2492_s1 + $0xe4] sm:$0xf] }
  0x1a   : > { %v1439_v17 = vor.u32 %v1490_v15, %v1438_v14  ;;  %674 = vmatpush.bf16.msra.mxu3 %v1451_v12  ;;  %v1379_v21 = vor.u32 %v1473_v18, %v1376_v19  ;;  %v1440_v22 = vld [vmem:[%s2492_s1 + $0xe8] sm:$0xf0]  ;;  %v1366_v23 = vld [vmem:[%s2492_s1 + $0x50] sm:$0xf]  ;;  %v1472_v24 = vld [vmem:[%s2492_s1 + $0x54] sm:$0xf0] }
  0x1b   : > { %v1443_v25 = vor.u32 %v1489_v20, %v1440_v22  ;;  %v1367_v26 = vor.u32 %v1472_v24, %v1366_v23  ;;  %v1430_v27 = vld [vmem:[%s2492_s1 + $0xd0] sm:$0xf]  ;;  %v1488_v28 = vld [vmem:[%s2492_s1 + $0xd4] sm:$0xf0]  ;;  %v1471_v29 = vld [vmem:[%s2492_s1 + $0x54] sm:$0xf] }
  0x1c   : > { %528 = vmatpush.bf16.msra.mxu0 %v1375_v16  ;;  %v1431_v30 = vor.u32 %v1488_v28, %v1430_v27  ;;  %v1368_v31 = vld [vmem:[%s2492_s1 + $0x58] sm:$0xf0]  ;;  %v1487_v32 = vld [vmem:[%s2492_s1 + $0xd4] sm:$0xf]  ;;  %v1358_v35 = vld [vmem:[%s2492_s1 + $0x40] sm:$0xf] }
  0x1d   : > { %577 = vmatpush.bf16.msra.mxu1 %v1439_v17  ;;  %v1432_v33 = vld [vmem:[%s2492_s1 + $0xd8] sm:$0xf0]  ;;  %626 = vmatpush.bf16.msra.mxu2 %v1379_v21  ;;  %v1371_v34 = vor.u32 %v1471_v29, %v1368_v31  ;;  %v1470_v36 = vld [vmem:[%s2492_s1 + $0x44] sm:$0xf0]  ;;  %v1422_v37 = vld [vmem:[%s2492_s1 + $0xc0] sm:$0xf] }
  0x1e   : > { %675 = vmatpush.bf16.msra.mxu3 %v1443_v25  ;;  %v1435_v38 = vor.u32 %v1487_v32, %v1432_v33  ;;  %v1486_v39 = vld [vmem:[%s2492_s1 + $0xc4] sm:$0xf0]  ;;  %v1469_v40 = vld [vmem:[%s2492_s1 + $0x44] sm:$0xf]  ;;  %v1360_v41 = vld [vmem:[%s2492_s1 + $0x48] sm:$0xf0]  ;;  %v1359_v42 = vor.u32 %v1470_v36, %v1358_v35 }
  0x1f   : > { %v1485_v43 = vld [vmem:[%s2492_s1 + $0xc4] sm:$0xf]  ;;  %v1424_v44 = vld [vmem:[%s2492_s1 + $0xc8] sm:$0xf0]  ;;  %v1423_v45 = vor.u32 %v1486_v39, %v1422_v37  ;;  %v1350_v46 = vld [vmem:[%s2492_s1 + $0x30] sm:$0xf]  ;;  %v1363_v48 = vor.u32 %v1469_v40, %v1360_v41 }
  0x20   : > { %529 = vmatpush.bf16.msra.mxu0 %v1367_v26  ;;  %v1468_v47 = vld [vmem:[%s2492_s1 + $0x34] sm:$0xf0]  ;;  %v1414_v49 = vld [vmem:[%s2492_s1 + $0xb0] sm:$0xf]  ;;  %v1427_v51 = vor.u32 %v1485_v43, %v1424_v44  ;;  %v1467_v52 = vld [vmem:[%s2492_s1 + $0x34] sm:$0xf] }
  0x21   : > { %578 = vmatpush.bf16.msra.mxu1 %v1431_v30  ;;  %627 = vmatpush.bf16.msra.mxu2 %v1371_v34  ;;  %v1484_v50 = vld [vmem:[%s2492_s1 + $0xb4] sm:$0xf0]  ;;  %v1352_v53 = vld [vmem:[%s2492_s1 + $0x38] sm:$0xf0]  ;;  %v1351_v54 = vor.u32 %v1468_v47, %v1350_v46  ;;  %v1483_v55 = vld [vmem:[%s2492_s1 + $0xb4] sm:$0xf] }
  0x22   : > { %676 = vmatpush.bf16.msra.mxu3 %v1435_v38  ;;  %v1416_v56 = vld [vmem:[%s2492_s1 + $0xb8] sm:$0xf0]  ;;  %v1415_v57 = vor.u32 %v1484_v50, %v1414_v49  ;;  %v1342_v58 = vld [vmem:[%s2492_s1 + $0x20] sm:$0xf]  ;;  %v1466_v59 = vld [vmem:[%s2492_s1 + $0x24] sm:$0xf0]  ;;  %v1355_v60 = vor.u32 %v1467_v52, %v1352_v53 }
  0x23   : > { %v1406_v61 = vld [vmem:[%s2492_s1 + $0xa0] sm:$0xf]  ;;  %v1482_v62 = vld [vmem:[%s2492_s1 + $0xa4] sm:$0xf0]  ;;  %v1419_v63 = vor.u32 %v1483_v55, %v1416_v56  ;;  %v1465_v0 = vld [vmem:[%s2492_s1 + $0x24] sm:$0xf]  ;;  %v1343_v2 = vor.u32 %v1466_v59, %v1342_v58 }
  0x24   : > { %530 = vmatpush.bf16.msra.mxu0 %v1359_v42  ;;  %v1344_v1 = vld [vmem:[%s2492_s1 + $0x28] sm:$0xf0]  ;;  %v1481_v3 = vld [vmem:[%s2492_s1 + $0xa4] sm:$0xf]  ;;  %v1407_v5 = vor.u32 %v1482_v62, %v1406_v61  ;;  %v1334_v6 = vld [vmem:[%s2492_s1 + $0x10] sm:$0xf] }
  0x25   : > { %579 = vmatpush.bf16.msra.mxu1 %v1423_v45  ;;  %628 = vmatpush.bf16.msra.mxu2 %v1363_v48  ;;  %v1408_v4 = vld [vmem:[%s2492_s1 + $0xa8] sm:$0xf0]  ;;  %v1464_v7 = vld [vmem:[%s2492_s1 + $0x14] sm:$0xf0]  ;;  %v1347_v8 = vor.u32 %v1465_v0, %v1344_v1  ;;  %v1398_v9 = vld [vmem:[%s2492_s1 + $0x90] sm:$0xf] }
  0x26   : > { %677 = vmatpush.bf16.msra.mxu3 %v1427_v51  ;;  %v1480_v10 = vld [vmem:[%s2492_s1 + $0x94] sm:$0xf0]  ;;  %v1411_v11 = vor.u32 %v1481_v3, %v1408_v4  ;;  %v1463_v12 = vld [vmem:[%s2492_s1 + $0x14] sm:$0xf]  ;;  %v1336_v13 = vld [vmem:[%s2492_s1 + $0x18] sm:$0xf0]  ;;  %v1335_v14 = vor.u32 %v1464_v7, %v1334_v6 }
  0x27   : > { %s208_s7 = scalar_select %p207_p12, %s1651_s19, 1  ;;  %v1479_v15 = vld [vmem:[%s2492_s1 + $0x94] sm:$0xf]  ;;  %v1400_v16 = vld [vmem:[%s2492_s1 + $0x98] sm:$0xf0]  ;;  %v1399_v17 = vor.u32 %v1480_v10, %v1398_v9  ;;  %v1339_v21 = vor.u32 %v1463_v12, %v1336_v13  ;;  %v253_v30 = vld [vmem:[#allocation2] sm:$0xff] }
  0x28   : > { %531 = vmatpush.bf16.msra.mxu0 %v1351_v54  ;;  %s284_s13 = scalar_select %p219_p13, 1, 0  ;;  %v1326_v18 = vld [vmem:[%s2492_s1] sm:$0xf]  ;;  %v1462_v19 = vld [vmem:[%s2492_s1 + $0x4] sm:$0xf0]  ;;  %v1403_v26 = vor.u32 %v1479_v15, %v1400_v16 }
  0x29   : > { %580 = vmatpush.bf16.msra.mxu1 %v1415_v57  ;;  %629 = vmatpush.bf16.msra.mxu2 %v1355_v60  ;;  %s2507_s7 = smov (!%p207_p12, %s208_s7), 1  ;;  %v252_v20 = vld [vmem:[#allocation2 + $0xb0] sm:$0xff]  ;;  %v1390_v22 = vld [vmem:[%s2492_s1 + $0x80] sm:$0xf]  ;;  %v1478_v23 = vld [vmem:[%s2492_s1 + $0x84] sm:$0xf0]  ;;  %v1327_v31 = vor.u32 %v1462_v19, %v1326_v18 }
  0x2a   : > { %678 = vmatpush.bf16.msra.mxu3 %v1419_v63  ;;  %v1461_v24 = vld [vmem:[%s2492_s1 + $0x4] sm:$0xf]  ;;  %v285_v25 = vstv %s284_s13  ;;  %v1328_v27 = vld [vmem:[%s2492_s1 + $0x8] sm:$0xf0]  ;;  %s1460_s12 = sshll.u32 %s2507_s7, 8  ;;  %v254_v28 = vld [vmem:[#allocation2 + $0xd8] sm:$0xff]  ;;  %v1391_v35 = vor.u32 %v1478_v23, %v1390_v22 }
  0x2b   : > { %vm1877_vm0 = vcmp.eq.s32.totalorder %v285_v25, 1  ;;  %v1477_v32 = vld [vmem:[%s2492_s1 + $0x84] sm:$0xf]  ;;  %v1392_v33 = vld [vmem:[%s2492_s1 + $0x88] sm:$0xf0]  ;;  %s1890_s7 = scalar_lea.vmem %s2491_s0, %s1460_s12  ;;  %v255_v34 = vld [vmem:[#allocation2 + $0x18] sm:$0xff]  ;;  %v1331_v39 = vor.u32 %v1461_v24, %v1328_v27 }
  0x2c   : > { %532 = vmatpush.bf16.msra.mxu0 %v1343_v2  ;;  %v220_v36 = vld [vmem:[%s1890_s7] sm:$0xff]  ;;  %v222_v37 = vld [vmem:[%s1890_s7 + $0x10] sm:$0xff]  ;;  %v221_v38 = vld [vmem:[%s1890_s7 + $0x8] sm:$0xff]  ;;  %v1395_v44 = vor.u32 %v1477_v32, %v1392_v33  ;;  %vm875_vm6 = vcmask 1040384  }
  0x2d   : > { %581 = vmatpush.bf16.msra.mxu1 %v1407_v5  ;;  %630 = vmatpush.bf16.msra.mxu2 %v1347_v8  ;;  %v287_v40 = vsel %vm1877_vm0, %v220_v36, %v252_v20  ;;  %v289_v41 = vsel %vm1877_vm0, %v222_v37, %v254_v28  ;;  %v223_v42 = vld [vmem:[%s1890_s7 + $0x18] sm:$0xff]  ;;  %v288_v43 = vsel %vm1877_vm0, %v221_v38, %v253_v30  ;;  %v256_v48 = vld [vmem:[#allocation2 + $0x50] sm:$0xff]  ;;  %v224_v50 = vld [vmem:[%s1890_s7 + $0x20] sm:$0xff] }
  0x2e   : > { %679 = vmatpush.bf16.msra.mxu3 %v1411_v11  ;;  %v319_v45 = vpack.c.bf16 %v289_v41, %v287_v40  ;;  %v290_v46 = vsel %vm1877_vm0, %v223_v42, %v255_v34  ;;  %v258_v49 = vld [vmem:[#allocation2 + $0x30] sm:$0xff]  ;;  %v257_v52 = vld [vmem:[#allocation2 + $0x68] sm:$0xff]  ;;  %v227_v54 = vld [vmem:[%s1890_s7 + $0x38] sm:$0xff]  ;;  %v291_v56 = vsel %vm1877_vm0, %v224_v50, %v256_v48 }
  0x2f   : > { %v320_v47 = vpack.c.bf16 %v290_v46, %v288_v43  ;;  %v226_v51 = vld [vmem:[%s1890_s7 + $0x30] sm:$0xff]  ;;  %v225_v53 = vld [vmem:[%s1890_s7 + $0x28] sm:$0xff]  ;;  %v260_v62 = vld [vmem:[#allocation2 + $0x80] sm:$0xff] }
  0x30   : > { %533 = vmatpush.bf16.msra.mxu0 %v1335_v14  ;;  %v259_v55 = vld [vmem:[#allocation2 + $0x48] sm:$0xff]  ;;  %v293_v57 = vsel %vm1877_vm0, %v226_v51, %v258_v49  ;;  %v292_v58 = vsel %vm1877_vm0, %v225_v53, %v257_v52  ;;  %v228_v0 = vld [vmem:[%s1890_s7 + $0x40] sm:$0xff]  ;;  %v230_v1 = vld [vmem:[%s1890_s7 + $0x50] sm:$0xff] }
  0x31   : > { %582 = vmatpush.bf16.msra.mxu1 %v1399_v17  ;;  %631 = vmatpush.bf16.msra.mxu2 %v1339_v21  ;;  %v294_v59 = vsel %vm1877_vm0, %v227_v54, %v259_v55  ;;  %v321_v60 = vpack.c.bf16 %v293_v57, %v291_v56  ;;  %v262_v63 = vld [vmem:[#allocation2 + $0xe8] sm:$0xff]  ;;  %v231_v3 = vld [vmem:[%s1890_s7 + $0x58] sm:$0xff]  ;;  %v295_v6 = vsel %vm1877_vm0, %v228_v0, %v260_v62  ;;  %v232_v12 = vld [vmem:[%s1890_s7 + $0x60] sm:$0xff] }
  0x32   : > { %680 = vmatpush.bf16.msra.mxu3 %v1403_v26  ;;  %v322_v61 = vpack.c.bf16 %v294_v59, %v292_v58  ;;  %v229_v2 = vld [vmem:[%s1890_s7 + $0x48] sm:$0xff]  ;;  %v263_v5 = vld [vmem:[#allocation2 + $0xb8] sm:$0xff]  ;;  %v297_v7 = vsel %vm1877_vm0, %v230_v1, %v262_v63  ;;  %v234_v13 = vld [vmem:[%s1890_s7 + $0x70] sm:$0xff] }
  0x33   : > { %v261_v4 = vld [vmem:[#allocation2 + $0x88] sm:$0xff]  ;;  %v298_v9 = vsel %vm1877_vm0, %v231_v3, %v263_v5  ;;  %v323_v10 = vpack.c.bf16 %v297_v7, %v295_v6  ;;  %v264_v14 = vld [vmem:[#allocation2 + $0x60] sm:$0xff]  ;;  %v235_v17 = vld [vmem:[%s1890_s7 + $0x78] sm:$0xff] }
  0x34   : > { %534 = vmatpush.bf16.msra.mxu0 %v1327_v31  ;;  %v296_v8 = vsel %vm1877_vm0, %v229_v2, %v261_v4  ;;  %v266_v15 = vld [vmem:[#allocation2 + $0x8] sm:$0xff]  ;;  %v265_v18 = vld [vmem:[#allocation2 + $0xf0] sm:$0xff]  ;;  %v267_v19 = vld [vmem:[#allocation2 + $0x78] sm:$0xff]  ;;  %v299_v20 = vsel %vm1877_vm0, %v232_v12, %v264_v14 }
  0x35   : > { %583 = vmatpush.bf16.msra.mxu1 %v1391_v35  ;;  %632 = vmatpush.bf16.msra.mxu2 %v1331_v39  ;;  %v324_v11 = vpack.c.bf16 %v298_v9, %v296_v8  ;;  %v233_v16 = vld [vmem:[%s1890_s7 + $0x68] sm:$0xff]  ;;  %v301_v21 = vsel %vm1877_vm0, %v234_v13, %v266_v15  ;;  %v302_v23 = vsel %vm1877_vm0, %v235_v17, %v267_v19  ;;  %v236_v26 = vld [vmem:[%s1890_s7 + $0x80] sm:$0xff]  ;;  %v238_v27 = vld [vmem:[%s1890_s7 + $0x90] sm:$0xff] }
  0x36   : > { %681 = vmatpush.bf16.msra.mxu3 %v1395_v44  ;;  %v300_v22 = vsel %vm1877_vm0, %v233_v16, %v265_v18  ;;  %v325_v24 = vpack.c.bf16 %v301_v21, %v299_v20  ;;  %v268_v28 = vld [vmem:[#allocation2 + $0x38] sm:$0xff]  ;;  %v270_v30 = vld [vmem:[#allocation2 + $0x40] sm:$0xff]  ;;  %v237_v31 = vld [vmem:[%s1890_s7 + $0x88] sm:$0xff] }
  0x37   : > { %535 = vmatmul.bf16.vlgmr.msra.gmra.mxu0 %v319_v45  ;;  %v326_v25 = vpack.c.bf16 %v302_v23, %v300_v22  ;;  %v239_v32 = vld [vmem:[%s1890_s7 + $0x98] sm:$0xff]  ;;  %v271_v34 = vld [vmem:[#allocation2 + $0xc8] sm:$0xff]  ;;  %v303_v35 = vsel %vm1877_vm0, %v236_v26, %v268_v28  ;;  %v305_v36 = vsel %vm1877_vm0, %v238_v27, %v270_v30  ;;  %v240_v41 = vld [vmem:[%s1890_s7 + $0xa0] sm:$0xff] }
  0x38   : > { %584 = vmatmul.bf16.vlgmr.msra.gmra.mxu1 %v320_v47  ;;  %633 = vmatmul.bf16.vlgmr.msra.gmra.mxu2 %v319_v45  ;;  %v269_v33 = vld [vmem:[#allocation2 + $0x58] sm:$0xff]  ;;  %v306_v38 = vsel %vm1877_vm0, %v239_v32, %v271_v34  ;;  %v327_v39 = vpack.c.bf16 %v305_v36, %v303_v35  ;;  %v242_v42 = vld [vmem:[%s1890_s7 + $0xb0] sm:$0xff]  ;;  %v272_v43 = vld [vmem:[#allocation2 + $0xe0] sm:$0xff] }
  0x39   : > { %682 = vmatmul.bf16.vlgmr.msra.gmra.mxu3 %v320_v47  ;;  %v304_v37 = vsel %vm1877_vm0, %v237_v31, %v269_v33  ;;  %v274_v44 = vld [vmem:[#allocation2 + $0x70] sm:$0xff]  ;;  %v241_v45 = vld [vmem:[%s1890_s7 + $0xa8] sm:$0xff]  ;;  %v243_v46 = vld [vmem:[%s1890_s7 + $0xb8] sm:$0xff]  ;;  %v307_v49 = vsel %vm1877_vm0, %v240_v41, %v272_v43 }
  0x3a   : > { %v328_v40 = vpack.c.bf16 %v306_v38, %v304_v37  ;;  %v273_v47 = vld [vmem:[#allocation2 + $0x90] sm:$0xff]  ;;  %v275_v48 = vld [vmem:[#allocation2 + $0xc0] sm:$0xff]  ;;  %v309_v50 = vsel %vm1877_vm0, %v242_v42, %v274_v44  ;;  %v276_v57 = vld [vmem:[#allocation2 + $0xa8] sm:$0xff] }
  0x3b   : > { %v308_v51 = vsel %vm1877_vm0, %v241_v45, %v273_v47  ;;  %v310_v52 = vsel %vm1877_vm0, %v243_v46, %v275_v48  ;;  %v329_v53 = vpack.c.bf16 %v309_v50, %v307_v49  ;;  %v244_v55 = vld [vmem:[%s1890_s7 + $0xc0] sm:$0xff]  ;;  %v246_v56 = vld [vmem:[%s1890_s7 + $0xd0] sm:$0xff]  ;;  %v245_v59 = vld [vmem:[%s1890_s7 + $0xc8] sm:$0xff] }
  0x3c   : > { %v330_v54 = vpack.c.bf16 %v310_v52, %v308_v51  ;;  %v278_v58 = vld [vmem:[#allocation2 + $0x10] sm:$0xff]  ;;  %v279_v62 = vld [vmem:[#allocation2 + $0x28] sm:$0xff]  ;;  %v311_v63 = vsel %vm1877_vm0, %v244_v55, %v276_v57  ;;  %v248_v5 = vld [vmem:[%s1890_s7 + $0xe0] sm:$0xff] }
  0x3d   : > { %v313_v0 = vsel %vm1877_vm0, %v246_v56, %v278_v58  ;;  %v250_v6 = vld [vmem:[%s1890_s7 + $0xf0] sm:$0xff]  ;;  %v280_v7 = vld [vmem:[#allocation2 + $0xa0] sm:$0xff]  ;;  %v249_v9 = vld [vmem:[%s1890_s7 + $0xe8] sm:$0xff] }
  0x3e   : > { %v331_v3 = vpack.c.bf16 %v313_v0, %v311_v63  ;;  %v282_v8 = vld [vmem:[#allocation2 + $0x20] sm:$0xff]  ;;  %v283_v12 = vld [vmem:[#allocation2 + $0x98] sm:$0xff]  ;;  %v315_v13 = vsel %vm1877_vm0, %v248_v5, %v280_v7 }
  0x3f   : > { %v317_v14 = vsel %vm1877_vm0, %v250_v6, %v282_v8 }
  0x40   : > { %v333_v17 = vpack.c.bf16 %v317_v14, %v315_v13 }
  0x47   : > { %540 = vmatmul.bf16.gmra.mxu0 %v321_v60 }
  0x48   : > { %589 = vmatmul.bf16.gmra.mxu1 %v322_v61  ;;  %638 = vmatmul.bf16.gmra.mxu2 %v321_v60  ;;  %v247_v60 = vld [vmem:[%s1890_s7 + $0xd8] sm:$0xff] }
  0x49   : > { %687 = vmatmul.bf16.gmra.mxu3 %v322_v61  ;;  %v277_v61 = vld [vmem:[#allocation2 + $0xd0] sm:$0xff]  ;;  %v314_v2 = vsel %vm1877_vm0, %v247_v60, %v279_v62 }
  0x4a   : > { %v312_v1 = vsel %vm1877_vm0, %v245_v59, %v277_v61 }
  0x4b   : > { %v332_v4 = vpack.c.bf16 %v314_v2, %v312_v1 }
  0x57   : > { %545 = vmatmul.bf16.gmra.mxu0 %v323_v10 }
  0x58   : > { %594 = vmatmul.bf16.gmra.mxu1 %v324_v11  ;;  %643 = vmatmul.bf16.gmra.mxu2 %v323_v10  ;;  %v251_v10 = vld [vmem:[%s1890_s7 + $0xf8] sm:$0xff] }
  0x59   : > { %692 = vmatmul.bf16.gmra.mxu3 %v324_v11  ;;  %v281_v11 = vld [vmem:[#allocation2 + $0xf8] sm:$0xff]  ;;  %v318_v16 = vsel %vm1877_vm0, %v251_v10, %v283_v12 }
  0x5a   : > { %v316_v15 = vsel %vm1877_vm0, %v249_v9, %v281_v11 }
  0x5b   : > { %v334_v18 = vpack.c.bf16 %v318_v16, %v316_v15 }
  0x67   : > { %550 = vmatmul.bf16.gmra.mxu0 %v325_v24 }
  0x68   : > { %599 = vmatmul.bf16.gmra.mxu1 %v326_v25  ;;  %648 = vmatmul.bf16.gmra.mxu2 %v325_v24 }
  0x69   : > { %697 = vmatmul.bf16.gmra.mxu3 %v326_v25 }
  0x77   : > { %555 = vmatmul.bf16.gmra.mxu0 %v327_v39 }
  0x78   : > { %604 = vmatmul.bf16.gmra.mxu1 %v328_v40  ;;  %653 = vmatmul.bf16.gmra.mxu2 %v327_v39 }
  0x79   : > { %702 = vmatmul.bf16.gmra.mxu3 %v328_v40 }
  0x87   : > { %560 = vmatmul.bf16.gmra.mxu0 %v329_v53 }
  0x88   : > { %609 = vmatmul.bf16.gmra.mxu1 %v330_v54  ;;  %658 = vmatmul.bf16.gmra.mxu2 %v329_v53 }
  0x89   : > { %707 = vmatmul.bf16.gmra.mxu3 %v330_v54 }
  0x97   : > { %565 = vmatmul.bf16.gmra.mxu0 %v331_v3 }
  0x98   : > { %614 = vmatmul.bf16.gmra.mxu1 %v332_v4  ;;  %663 = vmatmul.bf16.gmra.mxu2 %v331_v3 }
  0x99   : > { %712 = vmatmul.bf16.gmra.mxu3 %v332_v4 }
  0xa7   : > { %570 = vmatmul.bf16.gmra.mxu0 %v333_v17 }
  0xa8   : > { %619 = vmatmul.bf16.gmra.mxu1 %v334_v18  ;;  %668 = vmatmul.bf16.gmra.mxu2 %v333_v17 }
  0xa9   : > { %717 = vmatmul.bf16.gmra.mxu3 %v334_v18 }
  0xb4   : > { %v536_v19 = vpop.f32.mrf.mxu0 }
  0xb5   : > { %v585_v20 = vpop.f32.mrf.mxu1 }
  0xb6   : > { %v1988_v21 = vadd.f32 %v585_v20, %v536_v19 }
  0xb8   : > { %v767_v11 = vmul.f32 %v1988_v21, %v1988_v21 }
  0xbb   : > { %v634_v22 = vpop.f32.mrf.mxu2 }
  0xbc   : > { %v538_v23 = vpop.f32.mrf.mxu0  ;;  %v683_v24 = vpop.f32.mrf.mxu3 }
  0xbd   : > { %v587_v25 = vpop.f32.mrf.mxu1  ;;  %v1990_v26 = vadd.f32 %v683_v24, %v634_v22 }
  0xbe   : > { %v1992_v27 = vadd.f32 %v587_v25, %v538_v23 }
  0xc0   : > { %v769_v12 = vmul.f32 %v1992_v27, %v1992_v27  ;;  %v723_v13 = vadd.f32 %v1992_v27, %v1988_v21 }
  0xc2   : > { %v799_v19 = vadd.f32 %v769_v12, %v767_v11 }
  0xc3   : > { %v636_v29 = vpop.f32.mrf.mxu2 }
  0xc4   : > { %v541_v28 = vpop.f32.mrf.mxu0  ;;  %v685_v30 = vpop.f32.mrf.mxu3 }
  0xc5   : > { %v590_v31 = vpop.f32.mrf.mxu1  ;;  %v1994_v32 = vadd.f32 %v685_v30, %v636_v29 }
  0xc6   : > { %v1996_v33 = vadd.f32 %v590_v31, %v541_v28 }
  0xc7   : > { %v770_v30 = vmul.f32 %v1994_v32, %v1994_v32 }
  0xc8   : > { %v771_v14 = vmul.f32 %v1996_v33, %v1996_v33  ;;  %v724_v20 = vadd.f32 %v723_v13, %v1996_v33 }
  0xca   : > { %v800_v24 = vadd.f32 %v799_v19, %v771_v14 }
  0xcb   : > { %v639_v34 = vpop.f32.mrf.mxu2 }
  0xcc   : > { %v543_v35 = vpop.f32.mrf.mxu0  ;;  %v688_v36 = vpop.f32.mrf.mxu3 }
  0xcd   : > { %v592_v37 = vpop.f32.mrf.mxu1  ;;  %v1998_v38 = vadd.f32 %v688_v36, %v639_v34 }
  0xce   : > { %v2000_v39 = vadd.f32 %v592_v37, %v543_v35  ;;  %v768_v37 = vmul.f32 %v1990_v26, %v1990_v26 }
  0xd0   : > { %v773_v22 = vmul.f32 %v2000_v39, %v2000_v39  ;;  %v725_v25 = vadd.f32 %v724_v20, %v2000_v39 }
  0xd2   : > { %v801_v31 = vadd.f32 %v800_v24, %v773_v22 }
  0xd3   : > { %v641_v40 = vpop.f32.mrf.mxu2 }
  0xd4   : > { %v546_v41 = vpop.f32.mrf.mxu0  ;;  %v690_v42 = vpop.f32.mrf.mxu3 }
  0xd5   : > { %v595_v43 = vpop.f32.mrf.mxu1  ;;  %v2002_v44 = vadd.f32 %v690_v42, %v641_v40  ;;  %v744_v40 = vadd.f32 %v1994_v32, %v1990_v26 }
  0xd6   : > { %v2004_v45 = vadd.f32 %v595_v43, %v546_v41  ;;  %v772_v41 = vmul.f32 %v1998_v38, %v1998_v38 }
  0xd8   : > { %v775_v29 = vmul.f32 %v2004_v45, %v2004_v45  ;;  %v726_v34 = vadd.f32 %v725_v25, %v2004_v45 }
  0xda   : > { %v802_v42 = vadd.f32 %v801_v31, %v775_v29 }
  0xdb   : > { %v644_v46 = vpop.f32.mrf.mxu2 }
  0xdc   : > { %v548_v47 = vpop.f32.mrf.mxu0  ;;  %v693_v48 = vpop.f32.mrf.mxu3 }
  0xdd   : > { %v597_v49 = vpop.f32.mrf.mxu1  ;;  %v2006_v50 = vadd.f32 %v693_v48, %v644_v46 }
  0xde   : > { %v2041_v23 = vadd.f32 %v597_v49, %v548_v47 }
  0xdf   : > { %v776_v22 = vmul.f32 %v2006_v50, %v2006_v50 }
  0xe0   : > { %v777_v35 = vmul.f32 %v2041_v23, %v2041_v23  ;;  %v727_v43 = vadd.f32 %v726_v34, %v2041_v23 }
  0xe2   : > { %v803_v13 = vadd.f32 %v802_v42, %v777_v35 }
  0xe3   : > { %v646_v51 = vpop.f32.mrf.mxu2 }
  0xe4   : > { %v551_v52 = vpop.f32.mrf.mxu0  ;;  %v695_v53 = vpop.f32.mrf.mxu3 }
  0xe5   : > { %v600_v54 = vpop.f32.mrf.mxu1 }
  0xe6   : > { %v2046_v28 = vadd.f32 %v600_v54, %v551_v52  ;;  %v820_v52 = vadd.f32 %v770_v30, %v768_v37  ;;  %v745_v54 = vadd.f32 %v744_v40, %v1998_v38 }
  0xe8   : > { %v779_v46 = vmul.f32 %v2046_v28, %v2046_v28  ;;  %v728_v14 = vadd.f32 %v727_v43, %v2046_v28  ;;  %v821_v19 = vadd.f32 %v820_v52, %v772_v41  ;;  %v746_v20 = vadd.f32 %v745_v54, %v2002_v44 }
  0xeb   : > { %v2008_v55 = vpop.f32.mrf.mxu2 }
  0xec   : > { %v553_v56 = vpop.f32.mrf.mxu0  ;;  %v698_v57 = vpop.f32.mrf.mxu3 }
  0xed   : > { %v602_v58 = vpop.f32.mrf.mxu1  ;;  %v2082_v24 = vadd.f32 %v698_v57, %v2008_v55 }
  0xee   : > { %v2053_v36 = vadd.f32 %v602_v58, %v553_v56  ;;  %v774_v56 = vmul.f32 %v2002_v44, %v2002_v44  ;;  %v2071_v58 = vadd.f32 %v695_v53, %v646_v51  ;;  %v804_v51 = vadd.f32 %v803_v13, %v779_v46 }
  0xef   : > { %v780_v37 = vmul.f32 %v2082_v24, %v2082_v24 }
  0xf0   : > { %v729_v53 = vadd.f32 %v728_v14, %v2053_v36  ;;  %v822_v30 = vadd.f32 %v821_v19, %v774_v56 }
  0xf3   : > { %v2010_v59 = vpop.f32.mrf.mxu2 }
  0xf4   : > { %v556_v60 = vpop.f32.mrf.mxu0  ;;  %v2012_v61 = vpop.f32.mrf.mxu3 }
  0xf5   : > { %v605_v62 = vpop.f32.mrf.mxu1  ;;  %v2094_v31 = vadd.f32 %v2012_v61, %v2010_v59 }
  0xf6   : > { %v2064_v47 = vadd.f32 %v605_v62, %v556_v60  ;;  %v781_v60 = vmul.f32 %v2053_v36, %v2053_v36 }
  0xf7   : > { %v782_v52 = vmul.f32 %v2094_v31, %v2094_v31 }
  0xf8   : > { %v783_v25 = vmul.f32 %v2064_v47, %v2064_v47  ;;  %v805_v55 = vadd.f32 %v804_v51, %v781_v60  ;;  %v730_v57 = vadd.f32 %v729_v53, %v2064_v47 }
  0xfa   : > { %v806_v59 = vadd.f32 %v805_v55, %v783_v25 }
  0xfb   : > { %v2014_v63 = vpop.f32.mrf.mxu2 }
  0xfc   : > { %v558_v0 = vpop.f32.mrf.mxu0  ;;  %v2016_v1 = vpop.f32.mrf.mxu3 }
  0xfd   : > { %v607_v2 = vpop.f32.mrf.mxu1  ;;  %v2106_v40 = vadd.f32 %v2016_v1, %v2014_v63 }
  0xfe   : > { %v2076_v62 = vadd.f32 %v607_v2, %v558_v0  ;;  %v747_v0 = vadd.f32 %v746_v20, %v2006_v50  ;;  %v778_v2 = vmul.f32 %v2071_v58, %v2071_v58 }
  0xff   : > { %v784_v19 = vmul.f32 %v2106_v40, %v2106_v40 }
 0x100   : > { %v785_v34 = vmul.f32 %v2076_v62, %v2076_v62  ;;  %v731_v61 = vadd.f32 %v730_v57, %v2076_v62 }
 0x102   : > { %v807_v56 = vadd.f32 %v806_v59, %v785_v34 }
 0x103   : > { %v2018_v3 = vpop.f32.mrf.mxu2 }
 0x104   : > { %v561_v4 = vpop.f32.mrf.mxu0  ;;  %v2020_v5 = vpop.f32.mrf.mxu3 }
 0x105   : > { %v610_v6 = vpop.f32.mrf.mxu1  ;;  %v2118_v63 = vadd.f32 %v2020_v5, %v2018_v3 }
 0x106   : > { %v2087_v29 = vadd.f32 %v610_v6, %v561_v4  ;;  %v823_v4 = vadd.f32 %v822_v30, %v776_v22  ;;  %v748_v6 = vadd.f32 %v747_v0, %v2071_v58 }
 0x108   : > { %v787_v41 = vmul.f32 %v2087_v29, %v2087_v29  ;;  %v824_v43 = vadd.f32 %v823_v4, %v778_v2  ;;  %v749_v46 = vadd.f32 %v748_v6, %v2082_v24  ;;  %v732_v13 = vadd.f32 %v731_v61, %v2087_v29 }
 0x10a   : > { %v825_v14 = vadd.f32 %v824_v43, %v780_v37  ;;  %v750_v60 = vadd.f32 %v749_v46, %v2094_v31  ;;  %v808_v5 = vadd.f32 %v807_v56, %v787_v41 }
 0x10b   : > { %v2022_v7 = vpop.f32.mrf.mxu2 }
 0x10c   : > { %v563_v8 = vpop.f32.mrf.mxu0  ;;  %v2024_v9 = vpop.f32.mrf.mxu3  ;;  %v751_v25 = vadd.f32 %v750_v60, %v2106_v40 }
 0x10d   : > { %v612_v10 = vpop.f32.mrf.mxu1  ;;  %v2130_v3 = vadd.f32 %v2024_v9, %v2022_v7 }
 0x10e   : > { %v2099_v35 = vadd.f32 %v612_v10, %v563_v8  ;;  %v752_v57 = vadd.f32 %v751_v25, %v2118_v63 }
 0x10f   : > { %v788_v2 = vmul.f32 %v2130_v3, %v2130_v3 }
 0x110   : > { %v733_v20 = vadd.f32 %v732_v13, %v2099_v35 }
 0x113   : > { %v2034_v15 = vpop.f32.mrf.mxu2 }
 0x114   : > { %v566_v16 = vpop.f32.mrf.mxu0  ;;  %v2036_v17 = vpop.f32.mrf.mxu3 }
 0x115   : > { %v615_v18 = vpop.f32.mrf.mxu1  ;;  %v2141_v53 = vadd.f32 %v2036_v17, %v2034_v15 }
 0x116   : > { %v2111_v42 = vadd.f32 %v615_v18, %v566_v16  ;;  %v789_v16 = vmul.f32 %v2099_v35, %v2099_v35 }
 0x117   : > { %v790_v59 = vmul.f32 %v2141_v53, %v2141_v53 }
 0x118   : > { %v791_v22 = vmul.f32 %v2111_v42, %v2111_v42  ;;  %v809_v7 = vadd.f32 %v808_v5, %v789_v16  ;;  %v734_v9 = vadd.f32 %v733_v20, %v2111_v42 }
 0x11a   : > { %v810_v34 = vadd.f32 %v809_v7, %v791_v22 }
 0x11b   : > { %v2066_v48 = vpop.f32.mrf.mxu2 }
 0x11c   : > { %v568_v49 = vpop.f32.mrf.mxu0  ;;  %v713_v11 = vpop.f32.mrf.mxu3 }
 0x11d   : > { %v617_v12 = vpop.f32.mrf.mxu1  ;;  %v2150_v55 = vadd.f32 %v713_v11, %v2066_v48  ;;  %v753_v48 = vadd.f32 %v752_v57, %v2130_v3 }
 0x11e   : > { %v2123_v18 = vadd.f32 %v617_v12, %v568_v49  ;;  %v826_v49 = vadd.f32 %v825_v14, %v782_v52  ;;  %v786_v12 = vmul.f32 %v2118_v63, %v2118_v63 }
 0x11f   : > { %v754_v13 = vadd.f32 %v753_v48, %v2141_v53 }
 0x120   : > { %v793_v30 = vmul.f32 %v2123_v18, %v2123_v18  ;;  %v827_v0 = vadd.f32 %v826_v49, %v784_v19  ;;  %v735_v15 = vadd.f32 %v734_v9, %v2123_v18 }
 0x121   : > { %v755_v19 = vadd.f32 %v754_v13, %v2150_v55 }
 0x122   : > { %v828_v37 = vadd.f32 %v827_v0, %v786_v12  ;;  %v811_v11 = vadd.f32 %v810_v34, %v793_v30 }
 0x123   : > { %v666_v8 = vpop.f32.mrf.mxu2 }
 0x124   : > { %v571_v10 = vpop.f32.mrf.mxu0  ;;  %v715_v1 = vpop.f32.mrf.mxu3  ;;  %v829_v52 = vadd.f32 %v828_v37, %v788_v2 }
 0x125   : > { %v620_v54 = vpop.f32.mrf.mxu1  ;;  %v2158_v61 = vadd.f32 %v715_v1, %v666_v8 }
 0x126   : > { %v2135_v51 = vadd.f32 %v620_v54, %v571_v10  ;;  %v792_v54 = vmul.f32 %v2150_v55, %v2150_v55  ;;  %v830_v14 = vadd.f32 %v829_v52, %v790_v59 }
 0x127   : > { %v794_v60 = vmul.f32 %v2158_v61, %v2158_v61  ;;  %v756_v12 = vadd.f32 %v755_v19, %v2158_v61 }
 0x128   : > { %v795_v17 = vmul.f32 %v2135_v51, %v2135_v51  ;;  %v736_v43 = vadd.f32 %v735_v15, %v2135_v51  ;;  %v831_v22 = vadd.f32 %v830_v14, %v792_v54 }
 0x12a   : > { %v812_v16 = vadd.f32 %v811_v11, %v795_v17  ;;  %v832_v30 = vadd.f32 %v831_v22, %v794_v60 }
 0x12b   : > { %v669_v4 = vpop.f32.mrf.mxu2 }
 0x12c   : > { %v573_v6 = vpop.f32.mrf.mxu0  ;;  %v718_v41 = vpop.f32.mrf.mxu3 }
 0x12d   : > { %v622_v10 = vpop.f32.mrf.mxu1  ;;  %v2166_v56 = vadd.f32 %v718_v41, %v669_v4 }
 0x12e   : > { %v2162_v46 = vadd.f32 %v622_v10, %v573_v6 }
 0x12f   : > { %v796_v49 = vmul.f32 %v2166_v56, %v2166_v56  ;;  %v757_v2 = vadd.f32 %v756_v12, %v2166_v56 }
 0x130   : > { %v737_v8 = vadd.f32 %v736_v43, %v2162_v46  ;;  %v797_v1 = vmul.f32 %v2162_v46, %v2162_v46 }
 0x131   : > { %v833_v17 = vadd.f32 %v832_v30, %v796_v49 }
 0x132   : > { %v738_v5 = vrot.slane %v737_v8, 4  ;;  %v813_v20 = vadd.f32 %v812_v16, %v797_v1 }
 0x133   : > { %v671_v9 = vpop.f32.mrf.mxu2 }
 0x134   : > { %v739_v25 = vadd.f32 %v738_v5, %v737_v8  ;;  %v814_v7 = vrot.slane %v813_v20, 4  ;;  %v720_v0 = vpop.f32.mrf.mxu3 }
 0x135   : > { %v2179_v15 = vadd.f32 %v720_v0, %v671_v9 }
 0x136   : > { %v740_v57 = vrot.slane %v739_v25, 2  ;;  %v815_v34 = vadd.f32 %v814_v7, %v813_v20 }
 0x137   : > { %v758_v37 = vadd.f32 %v757_v2, %v2179_v15  ;;  %v798_v59 = vmul.f32 %v2179_v15, %v2179_v15 }
 0x138   : > { %v741_v4 = vadd.f32 %v740_v57, %v739_v25  ;;  %v816_v6 = vrot.slane %v815_v34, 2 }
 0x139   : > { %v759_v48 = vrot.slane %v758_v37, 4  ;;  %v834_v11 = vadd.f32 %v833_v17, %v798_v59 }
 0x13a   : > { %v742_v41 = vrot.slane %v741_v4, 1  ;;  %v817_v10 = vadd.f32 %v816_v6, %v815_v34 }
 0x13b   : > { %v760_v54 = vadd.f32 %v759_v48, %v758_v37  ;;  %v835_v13 = vrot.slane %v834_v11, 4 }
 0x13c   : > { %v743_v43 = vadd.f32 %v742_v41, %v741_v4  ;;  %v818_v52 = vrot.slane %v817_v10, 1 }
 0x13d   : > { %v761_v1 = vrot.slane %v760_v54, 2  ;;  %v836_v14 = vadd.f32 %v835_v13, %v834_v11 }
 0x13e   : > { %v765_v16 = vmul.f32 0.0078125, %v743_v43  ;;  %v819_v8 = vadd.f32 %v818_v52, %v817_v10 }
 0x13f   : > { %v762_v5 = vadd.f32 %v761_v1, %v760_v54  ;;  %v837_v20 = vrot.slane %v836_v14, 2 }
 0x140   : > { %v841_v60 = vmul.f32 0.0078125, %v819_v8  ;;  %v843_v19 = vmul.f32 %v765_v16, %v765_v16 }
 0x141   : > { %v763_v49 = vrot.slane %v762_v5, 1  ;;  %v838_v12 = vadd.f32 %v837_v20, %v836_v14 }
 0x142   : > { %v845_v22 = vsub.f32 %v841_v60, %v843_v19  ;;  %v849_v60 = vld [vmem:[%s2493_s2] sm:$0x3] }
 0x143   : > { %v764_v7 = vadd.f32 %v763_v49, %v762_v5  ;;  %v839_v9 = vrot.slane %v838_v12, 1 }
 0x144   : > { %v847_v25 = vmax.f32 %v845_v22, 0.0 }
 0x145   : > { %v766_v0 = vmul.f32 0.0078125, %v764_v7  ;;  %v840_v2 = vadd.f32 %v839_v9, %v838_v12 }
 0x146   : > { %v850_v30 = vadd.f32 1e-05, %v847_v25 }
 0x147   : > { %v842_v57 = vmul.f32 0.0078125, %v840_v2  ;;  %v844_v34 = vmul.f32 %v766_v0, %v766_v0 }
 0x148   : > { %1535 = vrsqrt.f32 %v850_v30  ;;  %vm858_vm5 = vweird.f32 %v850_v30 }
 0x149   : > { %v846_v17 = vsub.f32 %v842_v57, %v844_v34 }
 0x14b   : > { %v848_v4 = vmax.f32 %v846_v17, 0.0 }
 0x14d   : > { %v851_v37 = vadd.f32 1e-05, %v848_v4 }
 0x14e   : > { %v1536_v6 = vpop.eup %1535 }
 0x14f   : > { %v853_v59 = vmul.f32 %v1536_v6, %v850_v30  ;;  %1537 = vrsqrt.f32 %v851_v37  ;;  %vm859_vm2 = vweird.f32 %v1536_v6  ;;  %vm868_vm3 = vweird.f32 %v851_v37  ;;  %v879_v30 = vld [vmem:[%s2494_s3] sm:$0x3] }
 0x150   : > { %vm860_vm7 = vmor %vm858_vm5, %vm859_vm2 }
 0x151   : > { %v854_v41 = vmul.f32 %v1536_v6, %v853_v59 }
 0x153   : > { %v855_v48 = vmul.f32 0.5, %v854_v41 }
 0x155   : > { %v1538_v10 = vpop.eup %1537  ;;  %v856_v52 = vsub.f32 1.5, %v855_v48 }
 0x156   : > { %v863_v11 = vmul.f32 %v1538_v10, %v851_v37  ;;  %vm869_vm1 = vweird.f32 %v1538_v10 }
 0x157   : > { %v857_v8 = vmul.f32 %v1536_v6, %v856_v52  ;;  %vm870_vm4 = vmor %vm868_vm3, %vm869_vm1 }
 0x158   : > { %v864_v43 = vmul.f32 %v1538_v10, %v863_v11 }
 0x159   : > { %v861_v5 = vsel %vm860_vm7, %v1536_v6, %v857_v8 }
 0x15a   : > { %v865_v54 = vmul.f32 0.5, %v864_v43 }
 0x15c   : > { %v866_v13 = vsub.f32 1.5, %v865_v54 }
 0x15e   : > { %v867_v1 = vmul.f32 %v1538_v10, %v866_v13 }
 0x160   : > { %v871_v14 = vsel %vm870_vm4, %v1538_v10, %v867_v1 }
 0x161   : > { %v874_v19 = vrot.slane %v871_v14, 7 }
 0x163   : > { %v876_v20 = vsel %vm875_vm6, %v861_v5, %v874_v19 }
 0x164   : > { %v878_v22 = vmul.f32 %v876_v20, %v849_v60 }
 0x166   : > { %v881_v49 = vperm.slane %v878_v22, 0  ;;  %v882_v12 = vperm.slane %v878_v22, 1 }
 0x168   : > { %v886_v25 = vmul.f32 %v882_v12, %v766_v0  ;;  %v885_v7 = vmul.f32 %v881_v49, %v765_v16  ;;  %v893_v9 = vmul.f32 %v881_v49, %v1988_v21  ;;  %v894_v57 = vmul.f32 %v882_v12, %v1990_v26 }
 0x169   : > { %v895_v34 = vmul.f32 %v881_v49, %v1992_v27  ;;  %v896_v17 = vmul.f32 %v882_v12, %v1994_v32  ;;  %v897_v4 = vmul.f32 %v881_v49, %v1996_v33  ;;  %v898_v6 = vmul.f32 %v882_v12, %v1998_v38 }
 0x16a   : > { %v889_v2 = vrot.slane %v886_v25, 7  ;;  %v899_v0 = vmul.f32 %v881_v49, %v2000_v39  ;;  %v900_v16 = vmul.f32 %v882_v12, %v2002_v44  ;;  %v901_v37 = vmul.f32 %v881_v49, %v2004_v45 }
 0x16b   : > { %v902_v59 = vmul.f32 %v882_v12, %v2006_v50  ;;  %v903_v26 = vmul.f32 %v881_v49, %v2041_v23  ;;  %v904_v27 = vmul.f32 %v882_v12, %v2071_v58  ;;  %v905_v32 = vmul.f32 %v881_v49, %v2046_v28 }
 0x16c   : > { %v890_v21 = vsel %vm875_vm6, %v885_v7, %v889_v2  ;;  %v906_v33 = vmul.f32 %v882_v12, %v2082_v24  ;;  %v907_v38 = vmul.f32 %v881_v49, %v2053_v36  ;;  %v908_v39 = vmul.f32 %v882_v12, %v2094_v31 }
 0x16d   : > { %v892_v41 = vsub.f32 %v879_v30, %v890_v21  ;;  %v909_v44 = vmul.f32 %v881_v49, %v2064_v47  ;;  %v910_v10 = vmul.f32 %v882_v12, %v2106_v40  ;;  %v911_v45 = vmul.f32 %v881_v49, %v2076_v62 }
 0x16e   : > { %v912_v50 = vmul.f32 %v882_v12, %v2118_v63  ;;  %v913_v23 = vmul.f32 %v881_v49, %v2087_v29  ;;  %v914_v58 = vmul.f32 %v882_v12, %v2130_v3  ;;  %v915_v28 = vmul.f32 %v881_v49, %v2099_v35 }
 0x16f   : > { %v916_v24 = vmul.f32 %v882_v12, %v2141_v53  ;;  %v917_v36 = vmul.f32 %v881_v49, %v2111_v42  ;;  %v918_v31 = vmul.f32 %v882_v12, %v2150_v55  ;;  %v919_v47 = vmul.f32 %v881_v49, %v2123_v18 }
 0x170   : > { %v920_v40 = vmul.f32 %v882_v12, %v2158_v61  ;;  %v926_v48 = vperm.slane %v892_v41, 0  ;;  %v927_v62 = vperm.slane %v892_v41, 1  ;;  %v921_v63 = vmul.f32 %v881_v49, %v2135_v51 }
 0x171   : > { %v922_v29 = vmul.f32 %v882_v12, %v2166_v56  ;;  %v923_v3 = vmul.f32 %v881_v49, %v2162_v46  ;;  %v924_v35 = vmul.f32 %v882_v12, %v2179_v15 }
 0x172   : > { %v930_v11 = vadd.f32 %v926_v48, %v893_v9  ;;  %v931_v53 = vadd.f32 %v927_v62, %v894_v57  ;;  %v932_v43 = vadd.f32 %v926_v48, %v895_v34  ;;  %v933_v42 = vadd.f32 %v927_v62, %v896_v17 }
 0x173   : > { %v934_v52 = vadd.f32 %v926_v48, %v897_v4  ;;  %v935_v55 = vadd.f32 %v927_v62, %v898_v6  ;;  %v936_v54 = vadd.f32 %v926_v48, %v899_v0  ;;  %v937_v18 = vadd.f32 %v927_v62, %v900_v16 }
 0x174   : > { %v938_v13 = vadd.f32 %v926_v48, %v901_v37  ;;  %v939_v61 = vadd.f32 %v927_v62, %v902_v59  ;;  %v940_v8 = vadd.f32 %v926_v48, %v903_v26  ;;  %v941_v1 = vadd.f32 %v927_v62, %v904_v27 }
 0x175   : > { %v942_v14 = vadd.f32 %v926_v48, %v905_v32  ;;  %v943_v51 = vadd.f32 %v927_v62, %v906_v33  ;;  %v944_v60 = vadd.f32 %v926_v48, %v907_v38  ;;  %v945_v56 = vadd.f32 %v927_v62, %v908_v39 }
 0x176   : > { %v946_v19 = vadd.f32 %v926_v48, %v909_v44  ;;  %v947_v46 = vadd.f32 %v927_v62, %v910_v10  ;;  %v948_v5 = vadd.f32 %v926_v48, %v911_v45  ;;  %v949_v15 = vadd.f32 %v927_v62, %v912_v50 }
 0x177   : > { %v950_v20 = vadd.f32 %v926_v48, %v913_v23  ;;  %v951_v22 = vadd.f32 %v927_v62, %v914_v58  ;;  %v952_v49 = vadd.f32 %v926_v48, %v915_v28  ;;  %v953_v12 = vadd.f32 %v927_v62, %v916_v24 }
 0x178   : > { %v954_v25 = vadd.f32 %v926_v48, %v917_v36  ;;  %v955_v7 = vadd.f32 %v927_v62, %v918_v31  ;;  %v956_v9 = vadd.f32 %v926_v48, %v919_v47  ;;  %v957_v30 = vadd.f32 %v927_v62, %v920_v40 }
 0x179   : > { %v958_v2 = vadd.f32 %v926_v48, %v921_v63  ;;  %v959_v57 = vadd.f32 %v927_v62, %v922_v29  ;;  %v960_v34 = vadd.f32 %v926_v48, %v923_v3  ;;  %v961_v17 = vadd.f32 %v927_v62, %v924_v35 }
 0x17a   : > { %v2224_v4 = vmax.f32 %v930_v11, 0.0  ;;  %v2226_v6 = vmax.f32 %v931_v53, 0.0  ;;  %v2228_v0 = vmax.f32 %v932_v43, 0.0  ;;  %v2230_v16 = vmax.f32 %v933_v42, 0.0 }
 0x17b   : > { %v2232_v21 = vmax.f32 %v934_v52, 0.0  ;;  %v2234_v37 = vmax.f32 %v935_v55, 0.0  ;;  %v2236_v59 = vmax.f32 %v936_v54, 0.0  ;;  %v2238_v26 = vmax.f32 %v937_v18, 0.0 }
 0x17c   : > { %v2240_v41 = vmax.f32 %v938_v13, 0.0  ;;  %v2242_v27 = vmax.f32 %v939_v61, 0.0  ;;  %v2244_v32 = vmax.f32 %v940_v8, 0.0  ;;  %v2246_v33 = vmax.f32 %v941_v1, 0.0 }
 0x17d   : > { %v2248_v38 = vmax.f32 %v942_v14, 0.0  ;;  %v2250_v39 = vmax.f32 %v943_v51, 0.0  ;;  %v2252_v44 = vmax.f32 %v944_v60, 0.0  ;;  %v2254_v10 = vmax.f32 %v945_v56, 0.0  ;;  %997 = sbr.rel (%p1452_p0) target bundleno = 418 (0x1a2), region = 40 }
 0x17e   : > { %v2256_v45 = vmax.f32 %v946_v19, 0.0  ;;  %v2258_v50 = vmax.f32 %v947_v46, 0.0  ;;  %v2260_v23 = vmax.f32 %v948_v5, 0.0  ;;  %v2262_v58 = vmax.f32 %v949_v15, 0.0 }
 0x17f   : > { %v2264_v28 = vmax.f32 %v950_v20, 0.0  ;;  %v2266_v24 = vmax.f32 %v951_v22, 0.0  ;;  %v2268_v36 = vmax.f32 %v952_v49, 0.0  ;;  %v2270_v31 = vmax.f32 %v953_v12, 0.0 }
 0x180   : > { %v2272_v47 = vmax.f32 %v954_v25, 0.0  ;;  %v2274_v40 = vmax.f32 %v955_v7, 0.0  ;;  %v2276_v48 = vmax.f32 %v956_v9, 0.0  ;;  %v2278_v62 = vmax.f32 %v957_v30, 0.0 }
 0x181   : > { %v2280_v63 = vmax.f32 %v958_v2, 0.0  ;;  %v2282_v29 = vmax.f32 %v959_v57, 0.0  ;;  %v2284_v3 = vmax.f32 %v960_v34, 0.0  ;;  %v2286_v35 = vmax.f32 %v961_v17, 0.0 }
 0x182   : > { %998 = vst [vmem:[#allocation2 + $0xb0] sm:$0xff] %v2224_v4 }
 0x183   : > { %999 = vst [vmem:[#allocation2] sm:$0xff] %v2226_v6 }
 0x184   : > { %1000 = vst [vmem:[#allocation2 + $0xd8] sm:$0xff] %v2228_v0 }
 0x185   : > { %1001 = vst [vmem:[#allocation2 + $0x18] sm:$0xff] %v2230_v16 }
 0x186   : > { %1002 = vst [vmem:[#allocation2 + $0x50] sm:$0xff] %v2232_v21 }
 0x187   : > { %1003 = vst [vmem:[#allocation2 + $0x68] sm:$0xff] %v2234_v37 }
 0x188   : > { %1004 = vst [vmem:[#allocation2 + $0x30] sm:$0xff] %v2236_v59 }
 0x189   : > { %1005 = vst [vmem:[#allocation2 + $0x48] sm:$0xff] %v2238_v26 }
 0x18a   : > { %1006 = vst [vmem:[#allocation2 + $0x80] sm:$0xff] %v2240_v41 }
 0x18b   : > { %1007 = vst [vmem:[#allocation2 + $0x88] sm:$0xff] %v2242_v27 }
 0x18c   : > { %1008 = vst [vmem:[#allocation2 + $0xe8] sm:$0xff] %v2244_v32 }
 0x18d   : > { %1009 = vst [vmem:[#allocation2 + $0xb8] sm:$0xff] %v2246_v33 }
 0x18e   : > { %1010 = vst [vmem:[#allocation2 + $0x60] sm:$0xff] %v2248_v38 }
 0x18f   : > { %1011 = vst [vmem:[#allocation2 + $0xf0] sm:$0xff] %v2250_v39 }
 0x190   : > { %1012 = vst [vmem:[#allocation2 + $0x8] sm:$0xff] %v2252_v44 }
 0x191   : > { %1013 = vst [vmem:[#allocation2 + $0x78] sm:$0xff] %v2254_v10 }
 0x192   : > { %1014 = vst [vmem:[#allocation2 + $0x38] sm:$0xff] %v2256_v45 }
 0x193   : > { %1015 = vst [vmem:[#allocation2 + $0x58] sm:$0xff] %v2258_v50 }
 0x194   : > { %1016 = vst [vmem:[#allocation2 + $0x40] sm:$0xff] %v2260_v23 }
 0x195   : > { %1017 = vst [vmem:[#allocation2 + $0xc8] sm:$0xff] %v2262_v58 }
 0x196   : > { %1018 = vst [vmem:[#allocation2 + $0xe0] sm:$0xff] %v2264_v28 }
 0x197   : > { %1019 = vst [vmem:[#allocation2 + $0x90] sm:$0xff] %v2266_v24 }
 0x198   : > { %1020 = vst [vmem:[#allocation2 + $0x70] sm:$0xff] %v2268_v36 }
 0x199   : > { %1021 = vst [vmem:[#allocation2 + $0xc0] sm:$0xff] %v2270_v31 }
 0x19a   : > { %1022 = vst [vmem:[#allocation2 + $0xa8] sm:$0xff] %v2272_v47 }
 0x19b   : > { %1023 = vst [vmem:[#allocation2 + $0xd0] sm:$0xff] %v2274_v40 }
 0x19c   : > { %1024 = vst [vmem:[#allocation2 + $0x10] sm:$0xff] %v2276_v48 }
 0x19d   : > { %1025 = vst [vmem:[#allocation2 + $0x28] sm:$0xff] %v2278_v62 }
 0x19e   : > { %1026 = vst [vmem:[#allocation2 + $0xa0] sm:$0xff] %v2280_v63 }
 0x19f   : > { %1027 = vst [vmem:[#allocation2 + $0xf8] sm:$0xff] %v2282_v29 }
 0x1a0   : > { %1028 = vst [vmem:[#allocation2 + $0x20] sm:$0xff] %v2284_v3 }
 0x1a1   : > { %1029 = vst [vmem:[#allocation2 + $0x98] sm:$0xff] %v2286_v35 }
 0x1a2 PF: > { %p1030_p1 = scmp.gt.s32.totalorder %s1651_s19, 0 }
 0x1a4   : > { %p1031_p2 = pnand %p1030_p1, %p219_p13 }
 0x1a6   : > { %1034 = sbr.rel (%p1031_p2) target bundleno = 464 (0x1d0), region = 44 }
 0x1ab   : > { %v1035_v11 = vld [vmem:[#allocation2 + $0xb0] sm:$0xff]  ;;  %v1036_v53 = vld [vmem:[#allocation2] sm:$0xff]  ;;  %v1037_v43 = vld [vmem:[#allocation2 + $0xd8] sm:$0xff] }
 0x1ac   : > { %v1067_v42 = vadd.f32 %v1035_v11, %v2224_v4  ;;  %v1068_v52 = vadd.f32 %v1036_v53, %v2226_v6  ;;  %v1069_v55 = vadd.f32 %v1037_v43, %v2228_v0  ;;  %v1038_v54 = vld [vmem:[#allocation2 + $0x18] sm:$0xff]  ;;  %v1039_v18 = vld [vmem:[#allocation2 + $0x50] sm:$0xff]  ;;  %v1040_v13 = vld [vmem:[#allocation2 + $0x68] sm:$0xff] }
 0x1ad   : > { %v1070_v61 = vadd.f32 %v1038_v54, %v2230_v16  ;;  %v1071_v8 = vadd.f32 %v1039_v18, %v2232_v21  ;;  %v1072_v1 = vadd.f32 %v1040_v13, %v2234_v37  ;;  %v1041_v14 = vld [vmem:[#allocation2 + $0x30] sm:$0xff]  ;;  %v1042_v51 = vld [vmem:[#allocation2 + $0x48] sm:$0xff]  ;;  %v1043_v60 = vld [vmem:[#allocation2 + $0x80] sm:$0xff] }
 0x1ae   : > { %v1099_v56 = vmul.f32 0.5, %v1067_v42  ;;  %v1100_v19 = vmul.f32 0.5, %v1068_v52  ;;  %v1101_v46 = vmul.f32 0.5, %v1069_v55  ;;  %v1073_v5 = vadd.f32 %v1041_v14, %v2236_v59  ;;  %v1044_v15 = vld [vmem:[#allocation2 + $0x88] sm:$0xff]  ;;  %v1046_v7 = vld [vmem:[#allocation2 + $0xb8] sm:$0xff]  ;;  %v1047_v2 = vld [vmem:[#allocation2 + $0x60] sm:$0xff] }
 0x1af   : > { %v1102_v20 = vmul.f32 0.5, %v1070_v61  ;;  %v1074_v22 = vadd.f32 %v1042_v51, %v2238_v26  ;;  %v1045_v49 = vld [vmem:[#allocation2 + $0xe8] sm:$0xff]  ;;  %v1103_v12 = vmul.f32 0.5, %v1071_v8  ;;  %v1075_v25 = vadd.f32 %v1043_v60, %v2240_v41  ;;  %v1048_v17 = vld [vmem:[#allocation2 + $0xf0] sm:$0xff]  ;;  %v1050_v55 = vld [vmem:[#allocation2 + $0x78] sm:$0xff] }
 0x1b0   : > { %1131 = vst [vmem:[#allocation2 + $0xb0] sm:$0xff] %v1099_v56  ;;  %v1104_v9 = vmul.f32 0.5, %v1072_v1  ;;  %v1076_v30 = vadd.f32 %v1044_v15, %v2242_v27  ;;  %v1105_v57 = vmul.f32 0.5, %v1073_v5  ;;  %v1077_v34 = vadd.f32 %v1045_v49, %v2244_v32  ;;  %v1049_v43 = vld [vmem:[#allocation2 + $0x8] sm:$0xff]  ;;  %v1051_v13 = vld [vmem:[#allocation2 + $0x38] sm:$0xff]  ;;  %v1053_v60 = vld [vmem:[#allocation2 + $0x40] sm:$0xff] }
 0x1b1   : > { %1132 = vst [vmem:[#allocation2] sm:$0xff] %v1100_v19  ;;  %v1106_v11 = vmul.f32 0.5, %v1074_v22  ;;  %v1078_v53 = vadd.f32 %v1046_v7, %v2246_v33  ;;  %v1107_v42 = vmul.f32 0.5, %v1075_v25  ;;  %v1079_v52 = vadd.f32 %v1047_v2, %v2248_v38  ;;  %v1052_v1 = vld [vmem:[#allocation2 + $0x58] sm:$0xff] }
 0x1b2   : > { %1133 = vst [vmem:[#allocation2 + $0xd8] sm:$0xff] %v1101_v46  ;;  %v1108_v54 = vmul.f32 0.5, %v1076_v30  ;;  %v1080_v18 = vadd.f32 %v1048_v17, %v2250_v39  ;;  %v1109_v61 = vmul.f32 0.5, %v1077_v34  ;;  %v1081_v8 = vadd.f32 %v1049_v43, %v2252_v44  ;;  %v1054_v46 = vld [vmem:[#allocation2 + $0xc8] sm:$0xff] }
 0x1b3   : > { %1134 = vst [vmem:[#allocation2 + $0x18] sm:$0xff] %v1102_v20  ;;  %v1110_v14 = vmul.f32 0.5, %v1078_v53  ;;  %v1082_v51 = vadd.f32 %v1050_v55, %v2254_v10  ;;  %v1111_v56 = vmul.f32 0.5, %v1079_v52  ;;  %v1083_v19 = vadd.f32 %v1051_v13, %v2256_v45  ;;  %v1055_v20 = vld [vmem:[#allocation2 + $0xe0] sm:$0xff] }
 0x1b4   : > { %1135 = vst [vmem:[#allocation2 + $0x50] sm:$0xff] %v1103_v12  ;;  %v1112_v5 = vmul.f32 0.5, %v1080_v18  ;;  %v1084_v15 = vadd.f32 %v1052_v1, %v2258_v50  ;;  %v1113_v22 = vmul.f32 0.5, %v1081_v8  ;;  %v1085_v49 = vadd.f32 %v1053_v60, %v2260_v23  ;;  %v1056_v12 = vld [vmem:[#allocation2 + $0x90] sm:$0xff] }
 0x1b5   : > { %1136 = vst [vmem:[#allocation2 + $0x68] sm:$0xff] %v1104_v9  ;;  %v1114_v25 = vmul.f32 0.5, %v1082_v51  ;;  %v1086_v7 = vadd.f32 %v1054_v46, %v2262_v58  ;;  %v1057_v9 = vld [vmem:[#allocation2 + $0x70] sm:$0xff]  ;;  %v1115_v30 = vmul.f32 0.5, %v1083_v19  ;;  %v1087_v2 = vadd.f32 %v1055_v20, %v2264_v28 }
 0x1b6   : > { %1137 = vst [vmem:[#allocation2 + $0x30] sm:$0xff] %v1105_v57  ;;  %v1058_v57 = vld [vmem:[#allocation2 + $0xc0] sm:$0xff]  ;;  %v1116_v34 = vmul.f32 0.5, %v1084_v15  ;;  %v1088_v17 = vadd.f32 %v1056_v12, %v2266_v24  ;;  %v1117_v53 = vmul.f32 0.5, %v1085_v49  ;;  %v1089_v43 = vadd.f32 %v1057_v9, %v2268_v36 }
 0x1b7   : > { %1138 = vst [vmem:[#allocation2 + $0x48] sm:$0xff] %v1106_v11  ;;  %v1059_v11 = vld [vmem:[#allocation2 + $0xa8] sm:$0xff]  ;;  %v1118_v52 = vmul.f32 0.5, %v1086_v7  ;;  %v1090_v55 = vadd.f32 %v1058_v57, %v2270_v31  ;;  %v1119_v18 = vmul.f32 0.5, %v1087_v2 }
 0x1b8   : > { %1139 = vst [vmem:[#allocation2 + $0x80] sm:$0xff] %v1107_v42  ;;  %v1060_v42 = vld [vmem:[#allocation2 + $0xd0] sm:$0xff]  ;;  %v1091_v13 = vadd.f32 %v1059_v11, %v2272_v47  ;;  %v1120_v8 = vmul.f32 0.5, %v1088_v17  ;;  %v1121_v51 = vmul.f32 0.5, %v1089_v43 }
 0x1b9   : > { %1140 = vst [vmem:[#allocation2 + $0x88] sm:$0xff] %v1108_v54  ;;  %v1061_v54 = vld [vmem:[#allocation2 + $0x10] sm:$0xff]  ;;  %v1092_v1 = vadd.f32 %v1060_v42, %v2274_v40  ;;  %v1122_v19 = vmul.f32 0.5, %v1090_v55 }
 0x1ba   : > { %1141 = vst [vmem:[#allocation2 + $0xe8] sm:$0xff] %v1109_v61  ;;  %v1062_v61 = vld [vmem:[#allocation2 + $0x28] sm:$0xff]  ;;  %v1093_v60 = vadd.f32 %v1061_v54, %v2276_v48  ;;  %v1123_v15 = vmul.f32 0.5, %v1091_v13 }
 0x1bb   : > { %1142 = vst [vmem:[#allocation2 + $0xb8] sm:$0xff] %v1110_v14  ;;  %v1063_v14 = vld [vmem:[#allocation2 + $0xa0] sm:$0xff]  ;;  %v1094_v46 = vadd.f32 %v1062_v61, %v2278_v62  ;;  %v1124_v49 = vmul.f32 0.5, %v1092_v1 }
 0x1bc   : > { %1143 = vst [vmem:[#allocation2 + $0x60] sm:$0xff] %v1111_v56  ;;  %v1064_v56 = vld [vmem:[#allocation2 + $0xf8] sm:$0xff]  ;;  %v1095_v20 = vadd.f32 %v1063_v14, %v2280_v63 }
 0x1bd   : > { %1144 = vst [vmem:[#allocation2 + $0xf0] sm:$0xff] %v1112_v5  ;;  %v1065_v5 = vld [vmem:[#allocation2 + $0x20] sm:$0xff]  ;;  %v1096_v12 = vadd.f32 %v1064_v56, %v2282_v29  ;;  %v1126_v9 = vmul.f32 0.5, %v1094_v46 }
 0x1be   : > { %1145 = vst [vmem:[#allocation2 + $0x8] sm:$0xff] %v1113_v22  ;;  %v1066_v22 = vld [vmem:[#allocation2 + $0x98] sm:$0xff]  ;;  %v1097_v7 = vadd.f32 %v1065_v5, %v2284_v3  ;;  %v1127_v2 = vmul.f32 0.5, %v1095_v20 }
 0x1bf   : > { %1146 = vst [vmem:[#allocation2 + $0x78] sm:$0xff] %v1114_v25  ;;  %v1125_v25 = vmul.f32 0.5, %v1093_v60  ;;  %v1128_v57 = vmul.f32 0.5, %v1096_v12 }
 0x1c0   : > { %1147 = vst [vmem:[#allocation2 + $0x38] sm:$0xff] %v1115_v30  ;;  %v1098_v30 = vadd.f32 %v1066_v22, %v2286_v35 }
 0x1c1   : > { %1148 = vst [vmem:[#allocation2 + $0x58] sm:$0xff] %v1116_v34  ;;  %v1129_v34 = vmul.f32 0.5, %v1097_v7 }
 0x1c2   : > { %1149 = vst [vmem:[#allocation2 + $0x40] sm:$0xff] %v1117_v53  ;;  %v1130_v17 = vmul.f32 0.5, %v1098_v30 }
 0x1c3   : > { %1150 = vst [vmem:[#allocation2 + $0xc8] sm:$0xff] %v1118_v52 }
 0x1c4   : > { %1151 = vst [vmem:[#allocation2 + $0xe0] sm:$0xff] %v1119_v18 }
 0x1c5   : > { %1152 = vst [vmem:[#allocation2 + $0x90] sm:$0xff] %v1120_v8 }
 0x1c6   : > { %1153 = vst [vmem:[#allocation2 + $0x70] sm:$0xff] %v1121_v51 }
 0x1c7   : > { %1154 = vst [vmem:[#allocation2 + $0xc0] sm:$0xff] %v1122_v19 }
 0x1c8   : > { %1155 = vst [vmem:[#allocation2 + $0xa8] sm:$0xff] %v1123_v15 }
 0x1c9   : > { %1156 = vst [vmem:[#allocation2 + $0xd0] sm:$0xff] %v1124_v49 }
 0x1ca   : > { %1157 = vst [vmem:[#allocation2 + $0x10] sm:$0xff] %v1125_v25 }
 0x1cb   : > { %1158 = vst [vmem:[#allocation2 + $0x28] sm:$0xff] %v1126_v9 }
 0x1cc   : > { %1159 = vst [vmem:[#allocation2 + $0xa0] sm:$0xff] %v1127_v2 }
 0x1cd   : > { %1160 = vst [vmem:[#allocation2 + $0xf8] sm:$0xff] %v1128_v57 }
 0x1ce   : > { %1161 = vst [vmem:[#allocation2 + $0x20] sm:$0xff] %v1129_v34 }
 0x1cf   : > { %1162 = vst [vmem:[#allocation2 + $0x98] sm:$0xff] %v1130_v17 }
 0x1d0 PF: > { %1166 = sbr.rel (%p219_p13) target bundleno = 533 (0x215), region = 48 }
 0x1d5   : > { %1167 = vst [vmem:[#allocation2 + $0xb0] sm:$0xff] %v2224_v4 }
 0x1d6   : > { %1168 = vst [vmem:[#allocation2] sm:$0xff] %v2226_v6 }
 0x1d7   : > { %1169 = vst [vmem:[#allocation2 + $0xd8] sm:$0xff] %v2228_v0 }
 0x1d8   : > { %1170 = vst [vmem:[#allocation2 + $0x18] sm:$0xff] %v2230_v16 }
 0x1d9   : > { %1171 = vst [vmem:[#allocation2 + $0x50] sm:$0xff] %v2232_v21 }
 0x1da   : > { %1172 = vst [vmem:[#allocation2 + $0x68] sm:$0xff] %v2234_v37 }
 0x1db   : > { %1173 = vst [vmem:[#allocation2 + $0x30] sm:$0xff] %v2236_v59 }
 0x1dc   : > { %1174 = vst [vmem:[#allocation2 + $0x48] sm:$0xff] %v2238_v26 }
 0x1dd   : > { %1175 = vst [vmem:[#allocation2 + $0x80] sm:$0xff] %v2240_v41 }
 0x1de   : > { %1176 = vst [vmem:[#allocation2 + $0x88] sm:$0xff] %v2242_v27 }
 0x1df   : > { %1177 = vst [vmem:[#allocation2 + $0xe8] sm:$0xff] %v2244_v32 }
 0x1e0   : > { %1178 = vst [vmem:[#allocation2 + $0xb8] sm:$0xff] %v2246_v33 }
 0x1e1   : > { %1179 = vst [vmem:[#allocation2 + $0x60] sm:$0xff] %v2248_v38 }
 0x1e2   : > { %1180 = vst [vmem:[#allocation2 + $0xf0] sm:$0xff] %v2250_v39 }
 0x1e3   : > { %1181 = vst [vmem:[#allocation2 + $0x8] sm:$0xff] %v2252_v44 }
 0x1e4   : > { %1182 = vst [vmem:[#allocation2 + $0x78] sm:$0xff] %v2254_v10 }
 0x1e5   : > { %1183 = vst [vmem:[#allocation2 + $0x38] sm:$0xff] %v2256_v45 }
 0x1e6   : > { %1184 = vst [vmem:[#allocation2 + $0x58] sm:$0xff] %v2258_v50 }
 0x1e7   : > { %1185 = vst [vmem:[#allocation2 + $0x40] sm:$0xff] %v2260_v23 }
 0x1e8   : > { %1186 = vst [vmem:[#allocation2 + $0xc8] sm:$0xff] %v2262_v58 }
 0x1e9   : > { %1187 = vst [vmem:[#allocation2 + $0xe0] sm:$0xff] %v2264_v28 }
 0x1ea   : > { %1188 = vst [vmem:[#allocation2 + $0x90] sm:$0xff] %v2266_v24 }
 0x1eb   : > { %1189 = vst [vmem:[#allocation2 + $0x70] sm:$0xff] %v2268_v36 }
 0x1ec   : > { %1190 = vst [vmem:[#allocation2 + $0xc0] sm:$0xff] %v2270_v31 }
 0x1ed   : > { %1191 = vst [vmem:[#allocation2 + $0xa8] sm:$0xff] %v2272_v47 }
 0x1ee   : > { %1192 = vst [vmem:[#allocation2 + $0xd0] sm:$0xff] %v2274_v40 }
 0x1ef   : > { %1193 = vst [vmem:[#allocation2 + $0x10] sm:$0xff] %v2276_v48 }
 0x1f0   : > { %1194 = vst [vmem:[#allocation2 + $0x28] sm:$0xff] %v2278_v62 }
 0x1f1   : > { %1195 = vst [vmem:[#allocation2 + $0xa0] sm:$0xff] %v2280_v63 }
 0x1f2   : > { %1196 = vst [vmem:[#allocation2 + $0xf8] sm:$0xff] %v2282_v29 }
 0x1f3   : > { %1197 = vst [vmem:[#allocation2 + $0x20] sm:$0xff] %v2284_v3 }
 0x1f4   : > { %1198 = vst [vmem:[#allocation2 + $0x98] sm:$0xff] %v2286_v35 }
 0x1f5   : > { %1199 = vst [vmem:[%s2289_s9] sm:$0xff] %v2224_v4 }
 0x1f6   : > { %1200 = vst [vmem:[%s2289_s9 + $0x8] sm:$0xff] %v2226_v6 }
 0x1f7   : > { %1201 = vst [vmem:[%s2289_s9 + $0x10] sm:$0xff] %v2228_v0 }
 0x1f8   : > { %1202 = vst [vmem:[%s2289_s9 + $0x18] sm:$0xff] %v2230_v16 }
 0x1f9   : > { %1203 = vst [vmem:[%s2289_s9 + $0x20] sm:$0xff] %v2232_v21 }
 0x1fa   : > { %1204 = vst [vmem:[%s2289_s9 + $0x28] sm:$0xff] %v2234_v37 }
 0x1fb   : > { %1205 = vst [vmem:[%s2289_s9 + $0x30] sm:$0xff] %v2236_v59 }
 0x1fc   : > { %1206 = vst [vmem:[%s2289_s9 + $0x38] sm:$0xff] %v2238_v26 }
 0x1fd   : > { %1207 = vst [vmem:[%s2289_s9 + $0x40] sm:$0xff] %v2240_v41 }
 0x1fe   : > { %1208 = vst [vmem:[%s2289_s9 + $0x48] sm:$0xff] %v2242_v27 }
 0x1ff   : > { %1209 = vst [vmem:[%s2289_s9 + $0x50] sm:$0xff] %v2244_v32 }
 0x200   : > { %1210 = vst [vmem:[%s2289_s9 + $0x58] sm:$0xff] %v2246_v33 }
 0x201   : > { %1211 = vst [vmem:[%s2289_s9 + $0x60] sm:$0xff] %v2248_v38 }
 0x202   : > { %1212 = vst [vmem:[%s2289_s9 + $0x68] sm:$0xff] %v2250_v39 }
 0x203   : > { %1213 = vst [vmem:[%s2289_s9 + $0x70] sm:$0xff] %v2252_v44 }
 0x204   : > { %1214 = vst [vmem:[%s2289_s9 + $0x78] sm:$0xff] %v2254_v10 }
 0x205   : > { %1215 = vst [vmem:[%s2289_s9 + $0x80] sm:$0xff] %v2256_v45 }
 0x206   : > { %1216 = vst [vmem:[%s2289_s9 + $0x88] sm:$0xff] %v2258_v50 }
 0x207   : > { %1217 = vst [vmem:[%s2289_s9 + $0x90] sm:$0xff] %v2260_v23 }
 0x208   : > { %1218 = vst [vmem:[%s2289_s9 + $0x98] sm:$0xff] %v2262_v58 }
 0x209   : > { %1219 = vst [vmem:[%s2289_s9 + $0xa0] sm:$0xff] %v2264_v28 }
 0x20a   : > { %1220 = vst [vmem:[%s2289_s9 + $0xa8] sm:$0xff] %v2266_v24 }
 0x20b   : > { %1221 = vst [vmem:[%s2289_s9 + $0xb0] sm:$0xff] %v2268_v36 }
 0x20c   : > { %1222 = vst [vmem:[%s2289_s9 + $0xb8] sm:$0xff] %v2270_v31 }
 0x20d   : > { %1223 = vst [vmem:[%s2289_s9 + $0xc0] sm:$0xff] %v2272_v47 }
 0x20e   : > { %1224 = vst [vmem:[%s2289_s9 + $0xc8] sm:$0xff] %v2274_v40 }
 0x20f   : > { %1225 = vst [vmem:[%s2289_s9 + $0xd0] sm:$0xff] %v2276_v48 }
 0x210   : > { %1226 = vst [vmem:[%s2289_s9 + $0xd8] sm:$0xff] %v2278_v62 }
 0x211   : > { %1227 = vst [vmem:[%s2289_s9 + $0xe0] sm:$0xff] %v2280_v63 }
 0x212   : > { %1228 = vst [vmem:[%s2289_s9 + $0xe8] sm:$0xff] %v2282_v29 }
 0x213   : > { %1229 = vst [vmem:[%s2289_s9 + $0xf0] sm:$0xff] %v2284_v3 }
 0x214   : > { %1230 = vst [vmem:[%s2289_s9 + $0xf8] sm:$0xff] %v2286_v35 }
 0x215 PF: > { %s1455_s8 = sadd.s32 4294967294, %s1651_s19  ;;  %s1247_s10 = sshll.u32 %s2289_s9, 4  ;;  %s1248_s10 = int_to_ptr.vmem [resolvable:$true] %s1247_s10 }
 0x216   : > { %p1240_p3 = scmp.gt.s32.totalorder %s1455_s8, 0  ;;  %s1232_s22 = scalar_lea.sflag [#allocation4], %s204_s29 }
 0x217   : > { %s1559_s26 = scalar_lea.hbm %s2495_s4, 256 }
 0x218   : > { %s2509_s8 = smov (!%p1240_p3, %s1455_s8), 0 }
 0x219   : > { %s1493_s11 = sshll.u32 %s2509_s8, 8 }
 0x21a   : > { %s1246_s20 = scalar_lea.hbm %s2495_s4, %s1493_s11 }
 0x21b   : > { %s1249_s13 = sshll.u32 %s1246_s20, 4  ;;  %s1250_s13 = int_to_ptr.hbm [resolvable:$true] %s1249_s13 }
 0x21c   : > { %s1553_s23 = sshra.s32 %s1250_s13, 4  ;;  %s1554_s23 = int_to_ptr.hbm [resolvable:$true] %s1553_s23 }
 0x21d   : > { %s1555_s24 = scalar_lea.hbm %s1554_s23, 256  ;;  %p1560_p8 = scmp.lt.s32.totalorder %s1554_s23, %s2495_s4 }
 0x21e   : > { %p1556_p4 = scmp.ne.s32.totalorder %s1554_s23, %s1555_s24  ;;  %p1561_p10 = scmp.lt.s32.totalorder %s1559_s26, %s1555_s24 }
 0x220   : > { %p1557_p6 = pnand %p1556_p4, %p1664_p5  ;;  %p1562_p11 = por %p1561_p10, %p1560_p8 }
 0x222   : > { %p1558_p7 = pneg %p1557_p6 }
 0x224   : > { %p1563_p12 = pnand %p1562_p11, %p1558_p7 }
 0x226   : > { %1566 = shalt.err (!%p1563_p12)
}
 0x227   : > { %s1603_s29 = smov 256   ;;  %s1604_s6 = smov 16  }
 0x228   : > { %1494 = dma.vmem_to_hbm [thread:$0]  (%p1664_p5), %s1248_s10, 4096, %s1250_s13, %s1232_s22, %s1603_s29, %s1603_s29, %s1604_s6  }
 0x229 PF: > { %p1500_p13 = scmp.ge.s32.totalorder %s1601_s18, 2  ;;  %s1264_s9 = sand.u32 1, %s1589_s15  }
 0x22a   : > { %s1265_s8 = scalar_lea.sflag [#allocation4], %s1264_s9 }
 0x22b   : > { %p1497_p0 = pnand %p1500_p13, %p1669_p9 }
 0x22d   : > { %p1498_p1 = pneg %p1497_p0 }
 0x22f   : > { %1584 = dma.done.wait (%p1498_p1), %s1265_s8, 4096  }
 0x230   : > { %1586 = vsyncadd (%p1498_p1), %s1265_s8, 4294963200  ;;  %p14_p2 = scmp.ge.s32.totalorder %s1655_s21, 5   ;;  %s2500_s15 = smov %s1593_s16 }
 0x231   : > { %s2501_s16 = smov %s1597_s17  ;;  %s2502_s17 = smov %s1675_s28 }
 0x232   : > { %s2503_s18 = smov %s1655_s21  ;;  %16 = sbr.rel (!%p14_p2) target bundleno = 3 (0x3), region = 83 }
 0x237   :  { %1271 = vsyncpa [#allocation4], 1 }
 0x238   :  { %1273 = vsyncpa [#allocation4 + $0x1], 1 }

</bundles_post_ra>
